<compile_context>
chip_gen: v5e
topology: v5e:2x2
jax: 0.10.0
libtpu: 0.0.40
codegen_flags: <defaults>
</compile_context>

<pallas_src>
import functools

import jax
import jax.numpy as jnp
from jax.experimental import pallas as pl
from jax.experimental.pallas import tpu as pltpu

LN_EPS = 1e-5  # PyTorch LayerNorm default


def _round_up(x, m):
    return (x + m - 1) // m * m


# --------------------------------------------------------------------------
# In-kernel math helpers (all f32 elementwise)
# --------------------------------------------------------------------------
def _layer_norm(x, gamma, beta):
    mean = jnp.mean(x, axis=-1, keepdims=True)
    var = jnp.mean((x - mean) ** 2, axis=-1, keepdims=True)
    inv = jax.lax.rsqrt(var + LN_EPS)
    return (x - mean) * inv * gamma + beta


_ERF_P = 0.3275911
_ERF_A = (0.254829592, -0.284496736, 1.421413741, -1.453152027, 1.061405429)


def _erf_f32(x):
    # Abramowitz & Stegun 7.1.26: max abs error ~1.5e-7.
    sgn = jnp.where(x < 0, -1.0, 1.0)
    a = jnp.abs(x)
    t = 1.0 / (1.0 + _ERF_P * a)
    a1, a2, a3, a4, a5 = _ERF_A
    poly = ((((a5 * t + a4) * t + a3) * t + a2) * t + a1) * t
    return sgn * (1.0 - poly * jnp.exp(-a * a))


def _gelu_exact(x):
    # PyTorch nn.GELU() default (erf form).
    return 0.5 * x * (1.0 + _erf_f32(x * 0.7071067811865476))


# --------------------------------------------------------------------------
# Fused ViT kernel: grid = (batch_blocks, n_layers)
# --------------------------------------------------------------------------
def _vit_kernel(
    patches_ref, patch_w_ref, patch_b_ref, cls_ref, pos_ref,
    ln1_g_ref, ln1_b_ref, wqkv_ref, bqkv_ref, wo_ref, bo_ref,
    ln2_g_ref, ln2_b_ref, w1_ref, b1_ref, w2_ref, b2_ref,
    out_ref,
    tok_ref, qkv_ref, attn_ref,
    *, Bg, S, S_pad, n_heads, head_dim, mlp_chunk,
):
    layer = pl.program_id(1)
    H, dh = n_heads, head_dim
    HD = H * dh
    D = tok_ref.shape[-1]
    hidden = w1_ref.shape[-1]
    N = S - 1
    pad = S_pad - S

    # ---- layer-0 prologue: patch embed + class token + position embed ------
    @pl.when(layer == 0)
    def _():
        pos = pos_ref[...]                                   # (S, D)
        cls_row = cls_ref[...] + pos[0:1, :]                 # (1, D)
        pos_rest = pos[1:S, :]                               # (N, D)
        # Single M = Bg*N patch-embedding matmul (was Bg small matmuls).
        patches = patches_ref[...].astype(jnp.bfloat16)      # (Bg, N, CPP)
        emb_all = jnp.dot(patches.reshape(Bg * N, -1), patch_w_ref[...],
                          preferred_element_type=jnp.float32) + patch_b_ref[...]
        for b in range(Bg):                                  # prologue: runs once
            pieces = [cls_row, emb_all[b * N:(b + 1) * N, :] + pos_rest]
            if pad:
                pieces.append(jnp.zeros((pad, D), jnp.float32))  # keep pad rows finite
            tok_ref[b * S_pad:(b + 1) * S_pad, :] = jnp.concatenate(pieces, axis=0)

    x = tok_ref[...]                                         # (Bg*S_pad, D) f32

    # hoisted per-layer small params (loaded once, outside all loops)
    ln1_g, ln1_b = ln1_g_ref[0], ln1_b_ref[0]
    ln2_g, ln2_b = ln2_g_ref[0], ln2_b_ref[0]
    bqkv, bo, b2 = bqkv_ref[0], bo_ref[0], b2_ref[0]

    # ---- multi-head self-attention -----------------------------------------
    h = _layer_norm(x, ln1_g, ln1_b).astype(jnp.bfloat16)
    # Fused QKV projection over all rows; 1/sqrt(dh) folded into Wq in wrapper.
    qkv_ref[...] = (jnp.dot(h, wqkv_ref[0], preferred_element_type=jnp.float32)
                    + bqkv).astype(jnp.bfloat16)

    # Mask bias for padded key columns (hoisted out of the batch/head loops).
    col = jax.lax.broadcasted_iota(jnp.int32, (1, S_pad), 1)
    key_bias = jnp.where(col < S, 0.0, -1e30).astype(jnp.float32)

    @pl.loop(0, Bg)
    def _attend(b):
        r0 = pl.multiple_of(b * S_pad, 8)                    # aligned row offset
        qkv_b = qkv_ref[pl.ds(r0, S_pad), :]                 # (S_pad, 3*HD) bf16
        heads = []
        for hh in range(H):                                  # short fixed trip count
            c0 = hh * dh
            qh = qkv_b[:, c0:c0 + dh]
            kh = qkv_b[:, HD + c0:HD + c0 + dh]
            vh = qkv_b[:, 2 * HD + c0:2 * HD + c0 + dh]
            s = jax.lax.dot_general(qh, kh, (((1,), (1,)), ((), ())),
                                    preferred_element_type=jnp.float32)  # (S_pad, S_pad)
            s = s + key_bias
            s = s - jnp.max(s, axis=-1, keepdims=True)
            p = jnp.exp(s)
            p = p * pl.reciprocal(jnp.sum(p, axis=-1, keepdims=True), approx=True)
            heads.append(jnp.dot(p.astype(jnp.bfloat16), vh,
                                 preferred_element_type=jnp.float32))
        # Single aligned store per batch (no per-head partial stores).
        attn_ref[pl.ds(r0, S_pad), :] = jnp.concatenate(heads, -1).astype(jnp.bfloat16)

    # Single output projection over all rows / all heads (K = H*dh).
    attn_out = jnp.dot(attn_ref[...], wo_ref[0],
                       preferred_element_type=jnp.float32) + bo
    # TODO(synk): dropout after attention / MLP omitted (eval-mode identity).
    x = x + attn_out

    # ---- MLP branch, chunked along the hidden dimension ---------------------
    h2 = _layer_norm(x, ln2_g, ln2_b).astype(jnp.bfloat16)
    for c0 in range(0, hidden, mlp_chunk):
        c1 = min(c0 + mlp_chunk, hidden)
        m = jnp.dot(h2, w1_ref[0, :, c0:c1],
                    preferred_element_type=jnp.float32) + b1_ref[0, :, c0:c1]
        # TODO(synk): MLP submodule not in spec; standard ViT GELU assumed.
        m = _gelu_exact(m)
        x = x + jnp.dot(m.astype(jnp.bfloat16), w2_ref[0, c0:c1, :],
                        preferred_element_type=jnp.float32)
    x = x + b2
    tok_ref[...] = x

    # ---- last-layer epilogue: torch.sum(output, dim=1) ----------------------
    @pl.when(layer == pl.num_programs(1) - 1)
    def _():
        rows = [jnp.sum(x[b * S_pad:b * S_pad + S, :], axis=0, keepdims=True)
                for b in range(Bg)]
        out_ref[...] = jnp.concatenate(rows, axis=0)         # one (Bg, D) store


# --------------------------------------------------------------------------
# Wrapper / glue
# --------------------------------------------------------------------------
def extract_patches(x, patch_size):
    """NCHW image -> (B, n_patches, C*P*P).
    TODO(synk): Tokenizer module not in spec; standard ViT Conv2d(stride=P)
    patchify semantics assumed."""
    B, C, Hh, W = x.shape
    P = patch_size
    x = x.reshape(B, C, Hh // P, P, W // P, P)
    x = x.transpose(0, 2, 4, 1, 3, 5)                        # (B, H/P, W/P, C, P, P)
    return x.reshape(B, (Hh // P) * (W // P), C * P * P)


def prepare_vit_params(params, *, n_heads, head_dim):
    """Stack per-layer weights along a leading layer axis, fold the attention
    scale into the Q projection, and cast matmul weights to bf16."""
    HD = n_heads * head_dim
    scale = 1.0 / (head_dim ** 0.5)
    blocks = params["blocks"]

    def stack(name):
        return jnp.stack([blk[name] for blk in blocks], axis=0)

    wqkv = stack("wqkv")                                     # (L, D, 3*HD)
    bqkv = stack("bqkv")                                     # (L, 1, 3*HD)
    wqkv = wqkv.at[:, :, :HD].multiply(scale)                # fold 1/sqrt(dh) into Q
    bqkv = bqkv.at[:, :, :HD].multiply(scale)

    return {
        "patch_w": params["patch_w"].astype(jnp.bfloat16),
        "patch_b": params["patch_b"],
        "cls": params["cls_token"],
        "pos": params["pos_emb"],
        "ln1_g": stack("ln1_g"), "ln1_b": stack("ln1_b"),
        "wqkv": wqkv.astype(jnp.bfloat16), "bqkv": bqkv,
        "wo": stack("wo").astype(jnp.bfloat16), "bo": stack("bo"),
        "ln2_g": stack("ln2_g"), "ln2_b": stack("ln2_b"),
        "w1": stack("w1").astype(jnp.bfloat16), "b1": stack("b1"),
        "w2": stack("w2").astype(jnp.bfloat16), "b2": stack("b2"),
    }


def _nbytes(shape, dtype):
    n = 1
    for s in shape:
        n *= int(s)
    return n * jnp.dtype(dtype).itemsize


def vision_transformer_forward(x, prep, *, patch_size, n_heads, head_dim,
                               batch_blocks=1, mlp_chunk=None):
    """batch_blocks=1: fully collapsed batch (v5e/v6e, one TC per chip).
    batch_blocks=2: leading 'parallel' grid axis for v7x's two TensorCores."""
    B = x.shape[0]
    patches = extract_patches(x, patch_size)                 # (B, N, CPP)
    _, N, CPP = patches.shape
    D = prep["pos"].shape[-1]
    S = N + 1
    S_pad = _round_up(S, 8)                                  # aligned token rows
    L = prep["wqkv"].shape[0]
    HD = n_heads * head_dim
    hidden = prep["w1"].shape[-1]
    if mlp_chunk is None:
        mlp_chunk = hidden if hidden <= 512 else 512

    G = batch_blocks
    assert B % G == 0
    Bg = B // G
    M = Bg * S_pad

    kernel = functools.partial(
        _vit_kernel, Bg=Bg, S=S, S_pad=S_pad,
        n_heads=n_heads, head_dim=head_dim, mlp_chunk=mlp_chunk)

    def resident(shape):                                     # same block every step
        n = len(shape)
        return pl.BlockSpec(shape, lambda g, l, n=n: (0,) * n)

    def per_layer(shape):                                    # stacked (L, *shape)
        n = len(shape)
        return pl.BlockSpec((1,) + shape, lambda g, l, n=n: (l,) + (0,) * n)

    in_specs = [
        pl.BlockSpec((Bg, N, CPP), lambda g, l: (g, 0, 0)),  # patches
        resident((CPP, D)),                                  # patch_w (bf16)
        resident((1, D)),                                    # patch_b
        resident((1, D)),                                    # cls token
        resident((S, D)),                                    # pos emb
        per_layer((1, D)), per_layer((1, D)),                # ln1 g/b
        per_layer((D, 3 * HD)), per_layer((1, 3 * HD)),      # wqkv, bqkv
        per_layer((HD, D)), per_layer((1, D)),               # wo, bo
        per_layer((1, D)), per_layer((1, D)),                # ln2 g/b
        per_layer((D, hidden)), per_layer((1, hidden)),      # w1, b1
        per_layer((hidden, D)), per_layer((1, D)),           # w2, b2
    ]

    scratch_shapes = [
        pltpu.VMEM((M, D), jnp.float32),                     # tokens (resident, f32)
        pltpu.VMEM((M, 3 * HD), jnp.bfloat16),               # fused QKV (bf16)
        pltpu.VMEM((M, HD), jnp.bfloat16),                   # head outputs (bf16)
    ]

    # Explicit VMEM budget: scratches + double-buffered per-step blocks,
    # +100% headroom for compiler temporaries (per-head logits, MLP chunks).
    block_bytes = 0
    block_bytes += _nbytes((Bg, N, CPP), patches.dtype)
    block_bytes += _nbytes((CPP, D), jnp.bfloat16)
    block_bytes += 2 * _nbytes((1, D), jnp.float32)          # patch_b, cls
    block_bytes += _nbytes((S, D), jnp.float32)              # pos
    block_bytes += _nbytes((D, 3 * HD), jnp.bfloat16)
    block_bytes += _nbytes((1, 3 * HD), jnp.float32)
    block_bytes += _nbytes((HD, D), jnp.bfloat16)
    block_bytes += _nbytes((D, hidden), jnp.bfloat16)
    block_bytes += _nbytes((1, hidden), jnp.float32)
    block_bytes += _nbytes((hidden, D), jnp.bfloat16)
    block_bytes += 6 * _nbytes((1, D), jnp.float32)          # ln1/ln2 g,b + bo + b2
    block_bytes += _nbytes((Bg, D), jnp.float32)             # output block
    scratch_bytes = sum(_nbytes(s.shape, s.dtype) for s in scratch_shapes)
    vmem_limit = 2 * (2 * block_bytes + scratch_bytes)
    vmem_limit = min(max(vmem_limit, 16 << 20), 100 << 20)

    out = pl.pallas_call(
        kernel,
        grid=(G, L),
        in_specs=in_specs,
        out_specs=pl.BlockSpec((Bg, D), lambda g, l: (g, 0)),
        out_shape=jax.ShapeDtypeStruct((B, D), jnp.float32),
        scratch_shapes=scratch_shapes,
        compiler_params=pltpu.CompilerParams(
            dimension_semantics=("parallel", "arbitrary"),
            vmem_limit_bytes=vmem_limit),
    )(
        patches,
        prep["patch_w"], prep["patch_b"], prep["cls"], prep["pos"],
        prep["ln1_g"], prep["ln1_b"], prep["wqkv"], prep["bqkv"],
        prep["wo"], prep["bo"], prep["ln2_g"], prep["ln2_b"],
        prep["w1"], prep["b1"], prep["w2"], prep["b2"],
    )
    return out


def init_params(key, *, in_channels, patch_size, token_dim, n_layers,
                n_heads, head_dim, mlp_hidden, n_tokens):
    cpp = in_channels * patch_size * patch_size
    hd = n_heads * head_dim
    keys = jax.random.split(key, 3 + n_layers)

    def nrm(k, shape):
        return 0.02 * jax.random.normal(k, shape, jnp.float32)

    params = {
        "patch_w": nrm(keys[0], (cpp, token_dim)),
        "patch_b": jnp.zeros((1, token_dim), jnp.float32),
        "cls_token": nrm(keys[1], (1, token_dim)),
        "pos_emb": nrm(keys[2], (n_tokens, token_dim)),
        "blocks": [],
    }
    for i in range(n_layers):
        k = jax.random.split(keys[3 + i], 4)
        params["blocks"].append({
            "ln1_g": jnp.ones((1, token_dim), jnp.float32),
            "ln1_b": jnp.zeros((1, token_dim), jnp.float32),
            "wqkv": nrm(k[0], (token_dim, 3 * hd)),
            "bqkv": jnp.zeros((1, 3 * hd), jnp.float32),
            "wo": nrm(k[1], (hd, token_dim)),
            "bo": jnp.zeros((1, token_dim), jnp.float32),
            "ln2_g": jnp.ones((1, token_dim), jnp.float32),
            "ln2_b": jnp.zeros((1, token_dim), jnp.float32),
            "w1": nrm(k[2], (token_dim, mlp_hidden)),
            "b1": jnp.zeros((1, mlp_hidden), jnp.float32),
            "w2": nrm(k[3], (mlp_hidden, token_dim)),
            "b2": jnp.zeros((1, token_dim), jnp.float32),
        })
    return params


# --------------------------------------------------------------------------
if __name__ == "__main__":
    key = jax.random.PRNGKey(0)
    k_param, k_x = jax.random.split(key)

    # Small ViT config (n_classes unused by the reference forward pass).
    B, C, IMG, PATCH = 2, 3, 16, 4
    TOKEN_DIM = 32
    N_LAYERS = 2
    N_HEADS = 4
    HEAD_DIM = 8
    MLP_HIDDEN = 64
    N_TOKENS = (IMG // PATCH) ** 2 + 1  # 17

    params = init_params(
        k_param,
        in_channels=C, patch_size=PATCH, token_dim=TOKEN_DIM,
        n_layers=N_LAYERS, n_heads=N_HEADS, head_dim=HEAD_DIM,
        mlp_hidden=MLP_HIDDEN, n_tokens=N_TOKENS,
    )
    prep = prepare_vit_params(params, n_heads=N_HEADS, head_dim=HEAD_DIM)

    x = jax.random.normal(k_x, (B, C, IMG, IMG), jnp.float32)

    fwd = jax.jit(functools.partial(
        vision_transformer_forward,
        patch_size=PATCH, n_heads=N_HEADS, head_dim=HEAD_DIM,
        batch_blocks=1,   # set to 2 on v7x to spread batch over both TensorCores
    ))
    out = jax.block_until_ready(fwd(x, prep))

    assert out.shape == (B, TOKEN_DIM), out.shape
    assert bool(jnp.all(jnp.isfinite(out)))
    print("KERNEL_OK")
</pallas_src>

<mosaic_0001>
module attributes {stable_mosaic.version = 11 : i64} {
  func.func @_vit_kernel(%arg0: i32, %arg1: i32, %arg2: memref<2x16x48xf32, #tpu.memory_space<vmem>>, %arg3: memref<48x32xbf16, #tpu.memory_space<vmem>>, %arg4: memref<1x32xf32, #tpu.memory_space<vmem>>, %arg5: memref<1x32xf32, #tpu.memory_space<vmem>>, %arg6: memref<17x32xf32, #tpu.memory_space<vmem>>, %arg7: memref<1x1x32xf32, #tpu.memory_space<vmem>>, %arg8: memref<1x1x32xf32, #tpu.memory_space<vmem>>, %arg9: memref<1x32x96xbf16, #tpu.memory_space<vmem>>, %arg10: memref<1x1x96xf32, #tpu.memory_space<vmem>>, %arg11: memref<1x32x32xbf16, #tpu.memory_space<vmem>>, %arg12: memref<1x1x32xf32, #tpu.memory_space<vmem>>, %arg13: memref<1x1x32xf32, #tpu.memory_space<vmem>>, %arg14: memref<1x1x32xf32, #tpu.memory_space<vmem>>, %arg15: memref<1x32x64xbf16, #tpu.memory_space<vmem>>, %arg16: memref<1x1x64xf32, #tpu.memory_space<vmem>>, %arg17: memref<1x64x32xbf16, #tpu.memory_space<vmem>>, %arg18: memref<1x1x32xf32, #tpu.memory_space<vmem>>, %arg19: memref<2x32xf32, #tpu.memory_space<vmem>>, %arg20: memref<48x32xf32, #tpu.memory_space<vmem>>, %arg21: memref<48x96xbf16, #tpu.memory_space<vmem>>, %arg22: memref<48x32xbf16, #tpu.memory_space<vmem>>) attributes {dimension_semantics = [#tpu.dimension_semantics<parallel>, #tpu.dimension_semantics<arbitrary>], iteration_bounds = array<i64: 1, 2>, scalar_prefetch = 0 : i64, scratch_operands = 3 : i64, tpu.core_type = #tpu.core_type<tc>, window_params = [{transform_indices = @transform_0, window_bounds = array<i64: 2, 16, 48>}, {pipeline_mode = #tpu.pipeline_mode<synchronous>, transform_indices = @transform_1, window_bounds = array<i64: 48, 32>}, {pipeline_mode = #tpu.pipeline_mode<synchronous>, transform_indices = @transform_2, window_bounds = array<i64: 1, 32>}, {pipeline_mode = #tpu.pipeline_mode<synchronous>, transform_indices = @transform_3, window_bounds = array<i64: 1, 32>}, {pipeline_mode = #tpu.pipeline_mode<synchronous>, transform_indices = @transform_4, window_bounds = array<i64: 17, 32>}, {transform_indices = @transform_5, window_bounds = array<i64: 1, 1, 32>}, {transform_indices = @transform_6, window_bounds = array<i64: 1, 1, 32>}, {transform_indices = @transform_7, window_bounds = array<i64: 1, 32, 96>}, {transform_indices = @transform_8, window_bounds = array<i64: 1, 1, 96>}, {transform_indices = @transform_9, window_bounds = array<i64: 1, 32, 32>}, {transform_indices = @transform_10, window_bounds = array<i64: 1, 1, 32>}, {transform_indices = @transform_11, window_bounds = array<i64: 1, 1, 32>}, {transform_indices = @transform_12, window_bounds = array<i64: 1, 1, 32>}, {transform_indices = @transform_13, window_bounds = array<i64: 1, 32, 64>}, {transform_indices = @transform_14, window_bounds = array<i64: 1, 1, 64>}, {transform_indices = @transform_15, window_bounds = array<i64: 1, 64, 32>}, {transform_indices = @transform_16, window_bounds = array<i64: 1, 1, 32>}, {transform_indices = @transform_17, window_bounds = array<i64: 2, 32>}]} {
    %c0_i32 = arith.constant 0 : i32
    %0 = arith.cmpi eq, %arg1, %c0_i32 : i32
    %1 = arith.extui %0 : i1 to i32
    %c0_i32_0 = arith.constant 0 : i32
    %2 = arith.cmpi ne, %1, %c0_i32_0 : i32
    scf.if %2 {
      %c0_79 = arith.constant 0 : index
      %c0_80 = arith.constant 0 : index
      %144 = vector.load %arg6[%c0_79, %c0_80] : memref<17x32xf32, #tpu.memory_space<vmem>>, vector<17x32xf32>
      %c0_81 = arith.constant 0 : index
      %c0_82 = arith.constant 0 : index
      %145 = vector.load %arg5[%c0_81, %c0_82] : memref<1x32xf32, #tpu.memory_space<vmem>>, vector<1x32xf32>
      %146 = vector.extract_strided_slice %144 {offsets = [0, 0], sizes = [1, 32], strides = [1, 1]} : vector<17x32xf32> to vector<1x32xf32>
      %147 = arith.addf %145, %146 : vector<1x32xf32>
      %148 = vector.extract_strided_slice %144 {offsets = [1, 0], sizes = [16, 32], strides = [1, 1]} : vector<17x32xf32> to vector<16x32xf32>
      %c0_83 = arith.constant 0 : index
      %c0_84 = arith.constant 0 : index
      %c0_85 = arith.constant 0 : index
      %149 = vector.load %arg2[%c0_83, %c0_84, %c0_85] : memref<2x16x48xf32, #tpu.memory_space<vmem>>, vector<2x16x48xf32>
      %150 = arith.truncf %149 : vector<2x16x48xf32> to vector<2x16x48xbf16>
      %151 = vector.shape_cast %150 : vector<2x16x48xbf16> to vector<32x48xbf16>
      %c0_86 = arith.constant 0 : index
      %c0_87 = arith.constant 0 : index
      %152 = vector.load %arg3[%c0_86, %c0_87] : memref<48x32xbf16, #tpu.memory_space<vmem>>, vector<48x32xbf16>
      %cst_88 = arith.constant dense<0.000000e+00> : vector<32x32xf32>
      %153 = tpu.matmul %151, %152, %cst_88 {dimension_numbers = #tpu.dot_dimension_numbers<[1], [0], [0], [1], [0, 0, 1, 1], [], []>} : vector<32x48xbf16>, vector<48x32xbf16>, vector<32x32xf32> -> vector<32x32xf32>
      %c0_89 = arith.constant 0 : index
      %c0_90 = arith.constant 0 : index
      %154 = vector.load %arg4[%c0_89, %c0_90] : memref<1x32xf32, #tpu.memory_space<vmem>>, vector<1x32xf32>
      %155 = vector.broadcast %154 : vector<1x32xf32> to vector<32x32xf32>
      %156 = arith.addf %153, %155 : vector<32x32xf32>
      %157 = vector.extract_strided_slice %156 {offsets = [0, 0], sizes = [16, 32], strides = [1, 1]} : vector<32x32xf32> to vector<16x32xf32>
      %158 = arith.addf %157, %148 : vector<16x32xf32>
      %cst_91 = arith.constant 0.000000e+00 : f32
      %159 = vector.broadcast %cst_91 : f32 to vector<7x32xf32>
      %160 = tpu.concatenate %147, %158, %159 in 0 : vector<1x32xf32>, vector<16x32xf32>, vector<7x32xf32> -> vector<24x32xf32>
      %c0_92 = arith.constant 0 : index
      %c0_93 = arith.constant 0 : index
      %161 = vector.load %arg20[%c0_92, %c0_93] : memref<48x32xf32, #tpu.memory_space<vmem>>, vector<24x32xf32>
      tpu.vector_store %arg20[%c0_92, %c0_93], %160 {strides = array<i32>} : memref<48x32xf32, #tpu.memory_space<vmem>>, vector<24x32xf32>,
      %162 = vector.extract_strided_slice %156 {offsets = [16, 0], sizes = [16, 32], strides = [1, 1]} : vector<32x32xf32> to vector<16x32xf32>
      %163 = arith.addf %162, %148 : vector<16x32xf32>
      %cst_94 = arith.constant 0.000000e+00 : f32
      %164 = vector.broadcast %cst_94 : f32 to vector<7x32xf32>
      %165 = tpu.concatenate %147, %163, %164 in 0 : vector<1x32xf32>, vector<16x32xf32>, vector<7x32xf32> -> vector<24x32xf32>
      %c24 = arith.constant 24 : index
      %c0_95 = arith.constant 0 : index
      %166 = vector.load %arg20[%c24, %c0_95] : memref<48x32xf32, #tpu.memory_space<vmem>>, vector<24x32xf32>
      tpu.vector_store %arg20[%c24, %c0_95], %165 {strides = array<i32>} : memref<48x32xf32, #tpu.memory_space<vmem>>, vector<24x32xf32>,
    } else {
    }
    %c0 = arith.constant 0 : index
    %c0_1 = arith.constant 0 : index
    %3 = vector.load %arg20[%c0, %c0_1] : memref<48x32xf32, #tpu.memory_space<vmem>>, vector<48x32xf32>
    %c0_2 = arith.constant 0 : index
    %c0_3 = arith.constant 0 : index
    %c0_4 = arith.constant 0 : index
    %4 = vector.load %arg7[%c0_2, %c0_3, %c0_4] : memref<1x1x32xf32, #tpu.memory_space<vmem>>, vector<1x1x32xf32>
    %5 = vector.shape_cast %4 : vector<1x1x32xf32> to vector<1x32xf32>
    %c0_5 = arith.constant 0 : index
    %c0_6 = arith.constant 0 : index
    %c0_7 = arith.constant 0 : index
    %6 = vector.load %arg8[%c0_5, %c0_6, %c0_7] : memref<1x1x32xf32, #tpu.memory_space<vmem>>, vector<1x1x32xf32>
    %7 = vector.shape_cast %6 : vector<1x1x32xf32> to vector<1x32xf32>
    %c0_8 = arith.constant 0 : index
    %c0_9 = arith.constant 0 : index
    %c0_10 = arith.constant 0 : index
    %8 = vector.load %arg13[%c0_8, %c0_9, %c0_10] : memref<1x1x32xf32, #tpu.memory_space<vmem>>, vector<1x1x32xf32>
    %9 = vector.shape_cast %8 : vector<1x1x32xf32> to vector<1x32xf32>
    %c0_11 = arith.constant 0 : index
    %c0_12 = arith.constant 0 : index
    %c0_13 = arith.constant 0 : index
    %10 = vector.load %arg14[%c0_11, %c0_12, %c0_13] : memref<1x1x32xf32, #tpu.memory_space<vmem>>, vector<1x1x32xf32>
    %11 = vector.shape_cast %10 : vector<1x1x32xf32> to vector<1x32xf32>
    %c0_14 = arith.constant 0 : index
    %c0_15 = arith.constant 0 : index
    %c0_16 = arith.constant 0 : index
    %12 = vector.load %arg10[%c0_14, %c0_15, %c0_16] : memref<1x1x96xf32, #tpu.memory_space<vmem>>, vector<1x1x96xf32>
    %13 = vector.shape_cast %12 : vector<1x1x96xf32> to vector<1x96xf32>
    %c0_17 = arith.constant 0 : index
    %c0_18 = arith.constant 0 : index
    %c0_19 = arith.constant 0 : index
    %14 = vector.load %arg12[%c0_17, %c0_18, %c0_19] : memref<1x1x32xf32, #tpu.memory_space<vmem>>, vector<1x1x32xf32>
    %15 = vector.shape_cast %14 : vector<1x1x32xf32> to vector<1x32xf32>
    %c0_20 = arith.constant 0 : index
    %c0_21 = arith.constant 0 : index
    %c0_22 = arith.constant 0 : index
    %16 = vector.load %arg18[%c0_20, %c0_21, %c0_22] : memref<1x1x32xf32, #tpu.memory_space<vmem>>, vector<1x1x32xf32>
    %17 = vector.shape_cast %16 : vector<1x1x32xf32> to vector<1x32xf32>
    %cst = arith.constant dense<0.000000e+00> : vector<48xf32>
    %18 = vector.multi_reduction <add>, %3, %cst [1] : vector<48x32xf32> to vector<48xf32>
    %19 = vector.shape_cast %18 : vector<48xf32> to vector<48x1xf32>
    %cst_23 = arith.constant 3.200000e+01 : f32
    %20 = vector.broadcast %cst_23 : f32 to vector<48x1xf32>
    %21 = arith.divf %19, %20 : vector<48x1xf32>
    %22 = vector.broadcast %21 : vector<48x1xf32> to vector<48x32xf32>
    %23 = arith.subf %3, %22 : vector<48x32xf32>
    %24 = arith.mulf %23, %23 : vector<48x32xf32>
    %cst_24 = arith.constant dense<0.000000e+00> : vector<48xf32>
    %25 = vector.multi_reduction <add>, %24, %cst_24 [1] : vector<48x32xf32> to vector<48xf32>
    %26 = vector.shape_cast %25 : vector<48xf32> to vector<48x1xf32>
    %cst_25 = arith.constant 3.200000e+01 : f32
    %27 = vector.broadcast %cst_25 : f32 to vector<48x1xf32>
    %28 = arith.divf %26, %27 : vector<48x1xf32>
    %cst_26 = arith.constant 9.99999974E-6 : f32
    %29 = vector.broadcast %cst_26 : f32 to vector<48x1xf32>
    %30 = arith.addf %28, %29 : vector<48x1xf32>
    %31 = math.rsqrt %30 : vector<48x1xf32>
    %32 = vector.broadcast %21 : vector<48x1xf32> to vector<48x32xf32>
    %33 = arith.subf %3, %32 : vector<48x32xf32>
    %34 = vector.broadcast %31 : vector<48x1xf32> to vector<48x32xf32>
    %35 = arith.mulf %33, %34 : vector<48x32xf32>
    %36 = vector.broadcast %5 : vector<1x32xf32> to vector<48x32xf32>
    %37 = arith.mulf %35, %36 : vector<48x32xf32>
    %38 = vector.broadcast %7 : vector<1x32xf32> to vector<48x32xf32>
    %39 = arith.addf %37, %38 : vector<48x32xf32>
    %40 = arith.truncf %39 : vector<48x32xf32> to vector<48x32xbf16>
    %c0_27 = arith.constant 0 : index
    %c0_28 = arith.constant 0 : index
    %c0_29 = arith.constant 0 : index
    %41 = vector.load %arg9[%c0_27, %c0_28, %c0_29] : memref<1x32x96xbf16, #tpu.memory_space<vmem>>, vector<1x32x96xbf16>
    %42 = vector.shape_cast %41 : vector<1x32x96xbf16> to vector<32x96xbf16>
    %cst_30 = arith.constant dense<0.000000e+00> : vector<48x96xf32>
    %43 = tpu.matmul %40, %42, %cst_30 {dimension_numbers = #tpu.dot_dimension_numbers<[1], [0], [0], [1], [0, 0, 1, 1], [], []>} : vector<48x32xbf16>, vector<32x96xbf16>, vector<48x96xf32> -> vector<48x96xf32>
    %44 = vector.broadcast %13 : vector<1x96xf32> to vector<48x96xf32>
    %45 = arith.addf %43, %44 : vector<48x96xf32>
    %46 = arith.truncf %45 : vector<48x96xf32> to vector<48x96xbf16>
    %c0_31 = arith.constant 0 : index
    %c0_32 = arith.constant 0 : index
    %47 = vector.load %arg21[%c0_31, %c0_32] : memref<48x96xbf16, #tpu.memory_space<vmem>>, vector<48x96xbf16>
    tpu.vector_store %arg21[%c0_31, %c0_32], %46 {strides = array<i32>} : memref<48x96xbf16, #tpu.memory_space<vmem>>, vector<48x96xbf16>,
    %48 = tpu.iota {dimensions = array<i32: 1>} : vector<1x24xi32>
    %c17_i32 = arith.constant 17 : i32
    %49 = vector.broadcast %c17_i32 : i32 to vector<1x24xi32>
    %50 = arith.cmpi slt, %48, %49 : vector<1x24xi32>
    %cst_33 = arith.constant 0.000000e+00 : f32
    %cst_34 = arith.constant -1.000000e+30 : f32
    %51 = vector.broadcast %cst_33 : f32 to vector<1x24xf32>
    %52 = vector.broadcast %cst_34 : f32 to vector<1x24xf32>
    %53 = arith.select %50, %51, %52 : vector<1x24xi1>, vector<1x24xf32>
    %c0_i32_35 = arith.constant 0 : i32
    %c2_i32 = arith.constant 2 : i32
    %54 = arith.addi %c0_i32_35, %c2_i32 : i32
    %c1_i32 = arith.constant 1 : i32
    scf.for %arg23 = %c0_i32_35 to %54 step %c1_i32  : i32 {
      %c1_i32_79 = arith.constant 1 : i32
      %144 = arith.muli %arg23, %c1_i32_79 : i32
      %c0_i32_80 = arith.constant 0 : i32
      %145 = arith.addi %c0_i32_80, %144 : i32
      %c24_i32 = arith.constant 24 : i32
      %146 = arith.muli %145, %c24_i32 : i32
      %147 = tpu.assume_multiple %146, 8 : i32
      %148 = arith.index_cast %147 : i32 to index
      %c0_81 = arith.constant 0 : index
      %149 = vector.load %arg21[%148, %c0_81] : memref<48x96xbf16, #tpu.memory_space<vmem>>, vector<24x96xbf16>
      %150 = vector.extract_strided_slice %149 {offsets = [0, 0], sizes = [24, 8], strides = [1, 1]} : vector<24x96xbf16> to vector<24x8xbf16>
      %151 = vector.extract_strided_slice %149 {offsets = [0, 32], sizes = [24, 8], strides = [1, 1]} : vector<24x96xbf16> to vector<24x8xbf16>
      %152 = vector.extract_strided_slice %149 {offsets = [0, 64], sizes = [24, 8], strides = [1, 1]} : vector<24x96xbf16> to vector<24x8xbf16>
      %cst_82 = arith.constant dense<0.000000e+00> : vector<24x24xf32>
      %153 = tpu.matmul %150, %151, %cst_82 {dimension_numbers = #tpu.dot_dimension_numbers<[1], [1], [0], [0], [0, 0, 1, 0], [], []>} : vector<24x8xbf16>, vector<24x8xbf16>, vector<24x24xf32> -> vector<24x24xf32>
      %154 = vector.broadcast %53 : vector<1x24xf32> to vector<24x24xf32>
      %155 = arith.addf %153, %154 : vector<24x24xf32>
      %cst_83 = arith.constant dense<0xFF800000> : vector<24xf32>
      %156 = vector.multi_reduction <maximumf>, %155, %cst_83 [1] : vector<24x24xf32> to vector<24xf32>
      %157 = vector.shape_cast %156 : vector<24xf32> to vector<24x1xf32>
      %158 = vector.broadcast %157 : vector<24x1xf32> to vector<24x24xf32>
      %159 = arith.subf %155, %158 : vector<24x24xf32>
      %160 = math.exp %159 : vector<24x24xf32>
      %cst_84 = arith.constant dense<0.000000e+00> : vector<24xf32>
      %161 = vector.multi_reduction <add>, %160, %cst_84 [1] : vector<24x24xf32> to vector<24xf32>
      %162 = vector.shape_cast %161 : vector<24xf32> to vector<24x1xf32>
      %163 = tpu.reciprocal %162 {approx = true} : vector<24x1xf32> -> vector<24x1xf32>
      %164 = vector.broadcast %163 : vector<24x1xf32> to vector<24x24xf32>
      %165 = arith.mulf %160, %164 : vector<24x24xf32>
      %166 = arith.truncf %165 : vector<24x24xf32> to vector<24x24xbf16>
      %cst_85 = arith.constant dense<0.000000e+00> : vector<24x8xf32>
      %167 = tpu.matmul %166, %152, %cst_85 {dimension_numbers = #tpu.dot_dimension_numbers<[1], [0], [0], [1], [0, 0, 1, 1], [], []>} : vector<24x24xbf16>, vector<24x8xbf16>, vector<24x8xf32> -> vector<24x8xf32>
      %168 = vector.extract_strided_slice %149 {offsets = [0, 8], sizes = [24, 8], strides = [1, 1]} : vector<24x96xbf16> to vector<24x8xbf16>
      %169 = vector.extract_strided_slice %149 {offsets = [0, 40], sizes = [24, 8], strides = [1, 1]} : vector<24x96xbf16> to vector<24x8xbf16>
      %170 = vector.extract_strided_slice %149 {offsets = [0, 72], sizes = [24, 8], strides = [1, 1]} : vector<24x96xbf16> to vector<24x8xbf16>
      %cst_86 = arith.constant dense<0.000000e+00> : vector<24x24xf32>
      %171 = tpu.matmul %168, %169, %cst_86 {dimension_numbers = #tpu.dot_dimension_numbers<[1], [1], [0], [0], [0, 0, 1, 0], [], []>} : vector<24x8xbf16>, vector<24x8xbf16>, vector<24x24xf32> -> vector<24x24xf32>
      %172 = vector.broadcast %53 : vector<1x24xf32> to vector<24x24xf32>
      %173 = arith.addf %171, %172 : vector<24x24xf32>
      %cst_87 = arith.constant dense<0xFF800000> : vector<24xf32>
      %174 = vector.multi_reduction <maximumf>, %173, %cst_87 [1] : vector<24x24xf32> to vector<24xf32>
      %175 = vector.shape_cast %174 : vector<24xf32> to vector<24x1xf32>
      %176 = vector.broadcast %175 : vector<24x1xf32> to vector<24x24xf32>
      %177 = arith.subf %173, %176 : vector<24x24xf32>
      %178 = math.exp %177 : vector<24x24xf32>
      %cst_88 = arith.constant dense<0.000000e+00> : vector<24xf32>
      %179 = vector.multi_reduction <add>, %178, %cst_88 [1] : vector<24x24xf32> to vector<24xf32>
      %180 = vector.shape_cast %179 : vector<24xf32> to vector<24x1xf32>
      %181 = tpu.reciprocal %180 {approx = true} : vector<24x1xf32> -> vector<24x1xf32>
      %182 = vector.broadcast %181 : vector<24x1xf32> to vector<24x24xf32>
      %183 = arith.mulf %178, %182 : vector<24x24xf32>
      %184 = arith.truncf %183 : vector<24x24xf32> to vector<24x24xbf16>
      %cst_89 = arith.constant dense<0.000000e+00> : vector<24x8xf32>
      %185 = tpu.matmul %184, %170, %cst_89 {dimension_numbers = #tpu.dot_dimension_numbers<[1], [0], [0], [1], [0, 0, 1, 1], [], []>} : vector<24x24xbf16>, vector<24x8xbf16>, vector<24x8xf32> -> vector<24x8xf32>
      %186 = vector.extract_strided_slice %149 {offsets = [0, 16], sizes = [24, 8], strides = [1, 1]} : vector<24x96xbf16> to vector<24x8xbf16>
      %187 = vector.extract_strided_slice %149 {offsets = [0, 48], sizes = [24, 8], strides = [1, 1]} : vector<24x96xbf16> to vector<24x8xbf16>
      %188 = vector.extract_strided_slice %149 {offsets = [0, 80], sizes = [24, 8], strides = [1, 1]} : vector<24x96xbf16> to vector<24x8xbf16>
      %cst_90 = arith.constant dense<0.000000e+00> : vector<24x24xf32>
      %189 = tpu.matmul %186, %187, %cst_90 {dimension_numbers = #tpu.dot_dimension_numbers<[1], [1], [0], [0], [0, 0, 1, 0], [], []>} : vector<24x8xbf16>, vector<24x8xbf16>, vector<24x24xf32> -> vector<24x24xf32>
      %190 = vector.broadcast %53 : vector<1x24xf32> to vector<24x24xf32>
      %191 = arith.addf %189, %190 : vector<24x24xf32>
      %cst_91 = arith.constant dense<0xFF800000> : vector<24xf32>
      %192 = vector.multi_reduction <maximumf>, %191, %cst_91 [1] : vector<24x24xf32> to vector<24xf32>
      %193 = vector.shape_cast %192 : vector<24xf32> to vector<24x1xf32>
      %194 = vector.broadcast %193 : vector<24x1xf32> to vector<24x24xf32>
      %195 = arith.subf %191, %194 : vector<24x24xf32>
      %196 = math.exp %195 : vector<24x24xf32>
      %cst_92 = arith.constant dense<0.000000e+00> : vector<24xf32>
      %197 = vector.multi_reduction <add>, %196, %cst_92 [1] : vector<24x24xf32> to vector<24xf32>
      %198 = vector.shape_cast %197 : vector<24xf32> to vector<24x1xf32>
      %199 = tpu.reciprocal %198 {approx = true} : vector<24x1xf32> -> vector<24x1xf32>
      %200 = vector.broadcast %199 : vector<24x1xf32> to vector<24x24xf32>
      %201 = arith.mulf %196, %200 : vector<24x24xf32>
      %202 = arith.truncf %201 : vector<24x24xf32> to vector<24x24xbf16>
      %cst_93 = arith.constant dense<0.000000e+00> : vector<24x8xf32>
      %203 = tpu.matmul %202, %188, %cst_93 {dimension_numbers = #tpu.dot_dimension_numbers<[1], [0], [0], [1], [0, 0, 1, 1], [], []>} : vector<24x24xbf16>, vector<24x8xbf16>, vector<24x8xf32> -> vector<24x8xf32>
      %204 = vector.extract_strided_slice %149 {offsets = [0, 24], sizes = [24, 8], strides = [1, 1]} : vector<24x96xbf16> to vector<24x8xbf16>
      %205 = vector.extract_strided_slice %149 {offsets = [0, 56], sizes = [24, 8], strides = [1, 1]} : vector<24x96xbf16> to vector<24x8xbf16>
      %206 = vector.extract_strided_slice %149 {offsets = [0, 88], sizes = [24, 8], strides = [1, 1]} : vector<24x96xbf16> to vector<24x8xbf16>
      %cst_94 = arith.constant dense<0.000000e+00> : vector<24x24xf32>
      %207 = tpu.matmul %204, %205, %cst_94 {dimension_numbers = #tpu.dot_dimension_numbers<[1], [1], [0], [0], [0, 0, 1, 0], [], []>} : vector<24x8xbf16>, vector<24x8xbf16>, vector<24x24xf32> -> vector<24x24xf32>
      %208 = vector.broadcast %53 : vector<1x24xf32> to vector<24x24xf32>
      %209 = arith.addf %207, %208 : vector<24x24xf32>
      %cst_95 = arith.constant dense<0xFF800000> : vector<24xf32>
      %210 = vector.multi_reduction <maximumf>, %209, %cst_95 [1] : vector<24x24xf32> to vector<24xf32>
      %211 = vector.shape_cast %210 : vector<24xf32> to vector<24x1xf32>
      %212 = vector.broadcast %211 : vector<24x1xf32> to vector<24x24xf32>
      %213 = arith.subf %209, %212 : vector<24x24xf32>
      %214 = math.exp %213 : vector<24x24xf32>
      %cst_96 = arith.constant dense<0.000000e+00> : vector<24xf32>
      %215 = vector.multi_reduction <add>, %214, %cst_96 [1] : vector<24x24xf32> to vector<24xf32>
      %216 = vector.shape_cast %215 : vector<24xf32> to vector<24x1xf32>
      %217 = tpu.reciprocal %216 {approx = true} : vector<24x1xf32> -> vector<24x1xf32>
      %218 = vector.broadcast %217 : vector<24x1xf32> to vector<24x24xf32>
      %219 = arith.mulf %214, %218 : vector<24x24xf32>
      %220 = arith.truncf %219 : vector<24x24xf32> to vector<24x24xbf16>
      %cst_97 = arith.constant dense<0.000000e+00> : vector<24x8xf32>
      %221 = tpu.matmul %220, %206, %cst_97 {dimension_numbers = #tpu.dot_dimension_numbers<[1], [0], [0], [1], [0, 0, 1, 1], [], []>} : vector<24x24xbf16>, vector<24x8xbf16>, vector<24x8xf32> -> vector<24x8xf32>
      %222 = tpu.concatenate %167, %185, %203, %221 in 1 : vector<24x8xf32>, vector<24x8xf32>, vector<24x8xf32>, vector<24x8xf32> -> vector<24x32xf32>
      %223 = arith.truncf %222 : vector<24x32xf32> to vector<24x32xbf16>
      %224 = arith.index_cast %147 : i32 to index
      %c0_98 = arith.constant 0 : index
      %225 = vector.load %arg22[%224, %c0_98] : memref<48x32xbf16, #tpu.memory_space<vmem>>, vector<24x32xbf16>
      tpu.vector_store %arg22[%224, %c0_98], %223 {strides = array<i32>} : memref<48x32xbf16, #tpu.memory_space<vmem>>, vector<24x32xbf16>,
    }
    %c2_i32_36 = arith.constant 2 : i32
    %c0_37 = arith.constant 0 : index
    %c0_38 = arith.constant 0 : index
    %55 = vector.load %arg22[%c0_37, %c0_38] : memref<48x32xbf16, #tpu.memory_space<vmem>>, vector<48x32xbf16>
    %c0_39 = arith.constant 0 : index
    %c0_40 = arith.constant 0 : index
    %c0_41 = arith.constant 0 : index
    %56 = vector.load %arg11[%c0_39, %c0_40, %c0_41] : memref<1x32x32xbf16, #tpu.memory_space<vmem>>, vector<1x32x32xbf16>
    %57 = vector.shape_cast %56 : vector<1x32x32xbf16> to vector<32x32xbf16>
    %cst_42 = arith.constant dense<0.000000e+00> : vector<48x32xf32>
    %58 = tpu.matmul %55, %57, %cst_42 {dimension_numbers = #tpu.dot_dimension_numbers<[1], [0], [0], [1], [0, 0, 1, 1], [], []>} : vector<48x32xbf16>, vector<32x32xbf16>, vector<48x32xf32> -> vector<48x32xf32>
    %59 = vector.broadcast %15 : vector<1x32xf32> to vector<48x32xf32>
    %60 = arith.addf %58, %59 : vector<48x32xf32>
    %61 = arith.addf %3, %60 : vector<48x32xf32>
    %cst_43 = arith.constant dense<0.000000e+00> : vector<48xf32>
    %62 = vector.multi_reduction <add>, %61, %cst_43 [1] : vector<48x32xf32> to vector<48xf32>
    %63 = vector.shape_cast %62 : vector<48xf32> to vector<48x1xf32>
    %cst_44 = arith.constant 3.200000e+01 : f32
    %64 = vector.broadcast %cst_44 : f32 to vector<48x1xf32>
    %65 = arith.divf %63, %64 : vector<48x1xf32>
    %66 = vector.broadcast %65 : vector<48x1xf32> to vector<48x32xf32>
    %67 = arith.subf %61, %66 : vector<48x32xf32>
    %68 = arith.mulf %67, %67 : vector<48x32xf32>
    %cst_45 = arith.constant dense<0.000000e+00> : vector<48xf32>
    %69 = vector.multi_reduction <add>, %68, %cst_45 [1] : vector<48x32xf32> to vector<48xf32>
    %70 = vector.shape_cast %69 : vector<48xf32> to vector<48x1xf32>
    %cst_46 = arith.constant 3.200000e+01 : f32
    %71 = vector.broadcast %cst_46 : f32 to vector<48x1xf32>
    %72 = arith.divf %70, %71 : vector<48x1xf32>
    %cst_47 = arith.constant 9.99999974E-6 : f32
    %73 = vector.broadcast %cst_47 : f32 to vector<48x1xf32>
    %74 = arith.addf %72, %73 : vector<48x1xf32>
    %75 = math.rsqrt %74 : vector<48x1xf32>
    %76 = vector.broadcast %65 : vector<48x1xf32> to vector<48x32xf32>
    %77 = arith.subf %61, %76 : vector<48x32xf32>
    %78 = vector.broadcast %75 : vector<48x1xf32> to vector<48x32xf32>
    %79 = arith.mulf %77, %78 : vector<48x32xf32>
    %80 = vector.broadcast %9 : vector<1x32xf32> to vector<48x32xf32>
    %81 = arith.mulf %79, %80 : vector<48x32xf32>
    %82 = vector.broadcast %11 : vector<1x32xf32> to vector<48x32xf32>
    %83 = arith.addf %81, %82 : vector<48x32xf32>
    %84 = arith.truncf %83 : vector<48x32xf32> to vector<48x32xbf16>
    %c0_48 = arith.constant 0 : index
    %c0_49 = arith.constant 0 : index
    %c0_50 = arith.constant 0 : index
    %85 = vector.load %arg15[%c0_48, %c0_49, %c0_50] : memref<1x32x64xbf16, #tpu.memory_space<vmem>>, vector<1x32x64xbf16>
    %86 = vector.shape_cast %85 : vector<1x32x64xbf16> to vector<32x64xbf16>
    %cst_51 = arith.constant dense<0.000000e+00> : vector<48x64xf32>
    %87 = tpu.matmul %84, %86, %cst_51 {dimension_numbers = #tpu.dot_dimension_numbers<[1], [0], [0], [1], [0, 0, 1, 1], [], []>} : vector<48x32xbf16>, vector<32x64xbf16>, vector<48x64xf32> -> vector<48x64xf32>
    %c0_52 = arith.constant 0 : index
    %c0_53 = arith.constant 0 : index
    %c0_54 = arith.constant 0 : index
    %88 = vector.load %arg16[%c0_52, %c0_53, %c0_54] : memref<1x1x64xf32, #tpu.memory_space<vmem>>, vector<1x1x64xf32>
    %89 = vector.shape_cast %88 : vector<1x1x64xf32> to vector<1x64xf32>
    %90 = vector.broadcast %89 : vector<1x64xf32> to vector<48x64xf32>
    %91 = arith.addf %87, %90 : vector<48x64xf32>
    %cst_55 = arith.constant 5.000000e-01 : f32
    %92 = vector.broadcast %cst_55 : f32 to vector<48x64xf32>
    %93 = arith.mulf %92, %91 : vector<48x64xf32>
    %cst_56 = arith.constant 0.707106769 : f32
    %94 = vector.broadcast %cst_56 : f32 to vector<48x64xf32>
    %95 = arith.mulf %91, %94 : vector<48x64xf32>
    %cst_57 = arith.constant 0.000000e+00 : f32
    %96 = vector.broadcast %cst_57 : f32 to vector<48x64xf32>
    %97 = arith.cmpf olt, %95, %96 : vector<48x64xf32>
    %cst_58 = arith.constant -1.000000e+00 : f32
    %cst_59 = arith.constant 1.000000e+00 : f32
    %98 = vector.broadcast %cst_58 : f32 to vector<48x64xf32>
    %99 = vector.broadcast %cst_59 : f32 to vector<48x64xf32>
    %100 = arith.select %97, %98, %99 : vector<48x64xi1>, vector<48x64xf32>
    %101 = math.absf %95 : vector<48x64xf32>
    %cst_60 = arith.constant 0.327591091 : f32
    %102 = vector.broadcast %cst_60 : f32 to vector<48x64xf32>
    %103 = arith.mulf %102, %101 : vector<48x64xf32>
    %cst_61 = arith.constant 1.000000e+00 : f32
    %104 = vector.broadcast %cst_61 : f32 to vector<48x64xf32>
    %105 = arith.addf %104, %103 : vector<48x64xf32>
    %cst_62 = arith.constant 1.000000e+00 : f32
    %106 = vector.broadcast %cst_62 : f32 to vector<48x64xf32>
    %107 = arith.divf %106, %105 : vector<48x64xf32>
    %cst_63 = arith.constant 1.06140542 : f32
    %108 = vector.broadcast %cst_63 : f32 to vector<48x64xf32>
    %109 = arith.mulf %108, %107 : vector<48x64xf32>
    %cst_64 = arith.constant -1.45315206 : f32
    %110 = vector.broadcast %cst_64 : f32 to vector<48x64xf32>
    %111 = arith.addf %109, %110 : vector<48x64xf32>
    %112 = arith.mulf %111, %107 : vector<48x64xf32>
    %cst_65 = arith.constant 1.42141378 : f32
    %113 = vector.broadcast %cst_65 : f32 to vector<48x64xf32>
    %114 = arith.addf %112, %113 : vector<48x64xf32>
    %115 = arith.mulf %114, %107 : vector<48x64xf32>
    %cst_66 = arith.constant -0.284496725 : f32
    %116 = vector.broadcast %cst_66 : f32 to vector<48x64xf32>
    %117 = arith.addf %115, %116 : vector<48x64xf32>
    %118 = arith.mulf %117, %107 : vector<48x64xf32>
    %cst_67 = arith.constant 0.254829586 : f32
    %119 = vector.broadcast %cst_67 : f32 to vector<48x64xf32>
    %120 = arith.addf %118, %119 : vector<48x64xf32>
    %121 = arith.mulf %120, %107 : vector<48x64xf32>
    %cst_68 = arith.constant 0.000000e+00 : f32
    %122 = vector.broadcast %cst_68 : f32 to vector<48x64xf32>
    %123 = arith.subf %122, %101 : vector<48x64xf32>
    %124 = arith.mulf %123, %101 : vector<48x64xf32>
    %125 = math.exp %124 : vector<48x64xf32>
    %126 = arith.mulf %121, %125 : vector<48x64xf32>
    %cst_69 = arith.constant 1.000000e+00 : f32
    %127 = vector.broadcast %cst_69 : f32 to vector<48x64xf32>
    %128 = arith.subf %127, %126 : vector<48x64xf32>
    %129 = arith.mulf %100, %128 : vector<48x64xf32>
    %cst_70 = arith.constant 1.000000e+00 : f32
    %130 = vector.broadcast %cst_70 : f32 to vector<48x64xf32>
    %131 = arith.addf %130, %129 : vector<48x64xf32>
    %132 = arith.mulf %93, %131 : vector<48x64xf32>
    %133 = arith.truncf %132 : vector<48x64xf32> to vector<48x64xbf16>
    %c0_71 = arith.constant 0 : index
    %c0_72 = arith.constant 0 : index
    %c0_73 = arith.constant 0 : index
    %134 = vector.load %arg17[%c0_71, %c0_72, %c0_73] : memref<1x64x32xbf16, #tpu.memory_space<vmem>>, vector<1x64x32xbf16>
    %135 = vector.shape_cast %134 : vector<1x64x32xbf16> to vector<64x32xbf16>
    %cst_74 = arith.constant dense<0.000000e+00> : vector<48x32xf32>
    %136 = tpu.matmul %133, %135, %cst_74 {dimension_numbers = #tpu.dot_dimension_numbers<[1], [0], [0], [1], [0, 0, 1, 1], [], []>} : vector<48x64xbf16>, vector<64x32xbf16>, vector<48x32xf32> -> vector<48x32xf32>
    %137 = arith.addf %61, %136 : vector<48x32xf32>
    %138 = vector.broadcast %17 : vector<1x32xf32> to vector<48x32xf32>
    %139 = arith.addf %137, %138 : vector<48x32xf32>
    %c0_75 = arith.constant 0 : index
    %c0_76 = arith.constant 0 : index
    %140 = vector.load %arg20[%c0_75, %c0_76] : memref<48x32xf32, #tpu.memory_space<vmem>>, vector<48x32xf32>
    tpu.vector_store %arg20[%c0_75, %c0_76], %139 {strides = array<i32>} : memref<48x32xf32, #tpu.memory_space<vmem>>, vector<48x32xf32>,
    %c1_i32_77 = arith.constant 1 : i32
    %141 = arith.cmpi eq, %arg1, %c1_i32_77 : i32
    %142 = arith.extui %141 : i1 to i32
    %c0_i32_78 = arith.constant 0 : i32
    %143 = arith.cmpi ne, %142, %c0_i32_78 : i32
    scf.if %143 {
      %144 = vector.extract_strided_slice %139 {offsets = [0, 0], sizes = [17, 32], strides = [1, 1]} : vector<48x32xf32> to vector<17x32xf32>
      %cst_79 = arith.constant dense<0.000000e+00> : vector<32xf32>
      %145 = vector.multi_reduction <add>, %144, %cst_79 [0] : vector<17x32xf32> to vector<32xf32>
      %146 = vector.shape_cast %145 : vector<32xf32> to vector<1x32xf32>
      %147 = vector.extract_strided_slice %139 {offsets = [24, 0], sizes = [17, 32], strides = [1, 1]} : vector<48x32xf32> to vector<17x32xf32>
      %cst_80 = arith.constant dense<0.000000e+00> : vector<32xf32>
      %148 = vector.multi_reduction <add>, %147, %cst_80 [0] : vector<17x32xf32> to vector<32xf32>
      %149 = vector.shape_cast %148 : vector<32xf32> to vector<1x32xf32>
      %150 = tpu.concatenate %146, %149 in 0 : vector<1x32xf32>, vector<1x32xf32> -> vector<2x32xf32>
      %c0_81 = arith.constant 0 : index
      %c0_82 = arith.constant 0 : index
      %151 = vector.load %arg19[%c0_81, %c0_82] : memref<2x32xf32, #tpu.memory_space<vmem>>, vector<2x32xf32>
      tpu.vector_store %arg19[%c0_81, %c0_82], %150 {strides = array<i32>} : memref<2x32xf32, #tpu.memory_space<vmem>>, vector<2x32xf32>,
    } else {
    }
    return
  }
  func.func @transform_0(%arg0: i32, %arg1: i32) -> (i32, i32, i32) {
    %c0_i32 = arith.constant 0 : i32
    %c0_i32_0 = arith.constant 0 : i32
    %c0_i32_1 = arith.constant 0 : i32
    return %arg0, %c0_i32, %c0_i32_0 : i32, i32, i32
  }
  func.func @transform_1(%arg0: i32, %arg1: i32) -> (i32, i32) {
    %c0_i32 = arith.constant 0 : i32
    %c0_i32_0 = arith.constant 0 : i32
    %c0_i32_1 = arith.constant 0 : i32
    return %c0_i32, %c0_i32_0 : i32, i32
  }
  func.func @transform_2(%arg0: i32, %arg1: i32) -> (i32, i32) {
    %c0_i32 = arith.constant 0 : i32
    %c0_i32_0 = arith.constant 0 : i32
    %c0_i32_1 = arith.constant 0 : i32
    return %c0_i32, %c0_i32_0 : i32, i32
  }
  func.func @transform_3(%arg0: i32, %arg1: i32) -> (i32, i32) {
    %c0_i32 = arith.constant 0 : i32
    %c0_i32_0 = arith.constant 0 : i32
    %c0_i32_1 = arith.constant 0 : i32
    return %c0_i32, %c0_i32_0 : i32, i32
  }
  func.func @transform_4(%arg0: i32, %arg1: i32) -> (i32, i32) {
    %c0_i32 = arith.constant 0 : i32
    %c0_i32_0 = arith.constant 0 : i32
    %c0_i32_1 = arith.constant 0 : i32
    return %c0_i32, %c0_i32_0 : i32, i32
  }
  func.func @transform_5(%arg0: i32, %arg1: i32) -> (i32, i32, i32) {
    %c0_i32 = arith.constant 0 : i32
    %c0_i32_0 = arith.constant 0 : i32
    %c0_i32_1 = arith.constant 0 : i32
    return %arg1, %c0_i32, %c0_i32_0 : i32, i32, i32
  }
  func.func @transform_6(%arg0: i32, %arg1: i32) -> (i32, i32, i32) {
    %c0_i32 = arith.constant 0 : i32
    %c0_i32_0 = arith.constant 0 : i32
    %c0_i32_1 = arith.constant 0 : i32
    return %arg1, %c0_i32, %c0_i32_0 : i32, i32, i32
  }
  func.func @transform_7(%arg0: i32, %arg1: i32) -> (i32, i32, i32) {
    %c0_i32 = arith.constant 0 : i32
    %c0_i32_0 = arith.constant 0 : i32
    %c0_i32_1 = arith.constant 0 : i32
    return %arg1, %c0_i32, %c0_i32_0 : i32, i32, i32
  }
  func.func @transform_8(%arg0: i32, %arg1: i32) -> (i32, i32, i32) {
    %c0_i32 = arith.constant 0 : i32
    %c0_i32_0 = arith.constant 0 : i32
    %c0_i32_1 = arith.constant 0 : i32
    return %arg1, %c0_i32, %c0_i32_0 : i32, i32, i32
  }
  func.func @transform_9(%arg0: i32, %arg1: i32) -> (i32, i32, i32) {
    %c0_i32 = arith.constant 0 : i32
    %c0_i32_0 = arith.constant 0 : i32
    %c0_i32_1 = arith.constant 0 : i32
    return %arg1, %c0_i32, %c0_i32_0 : i32, i32, i32
  }
  func.func @transform_10(%arg0: i32, %arg1: i32) -> (i32, i32, i32) {
    %c0_i32 = arith.constant 0 : i32
    %c0_i32_0 = arith.constant 0 : i32
    %c0_i32_1 = arith.constant 0 : i32
    return %arg1, %c0_i32, %c0_i32_0 : i32, i32, i32
  }
  func.func @transform_11(%arg0: i32, %arg1: i32) -> (i32, i32, i32) {
    %c0_i32 = arith.constant 0 : i32
    %c0_i32_0 = arith.constant 0 : i32
    %c0_i32_1 = arith.constant 0 : i32
    return %arg1, %c0_i32, %c0_i32_0 : i32, i32, i32
  }
  func.func @transform_12(%arg0: i32, %arg1: i32) -> (i32, i32, i32) {
    %c0_i32 = arith.constant 0 : i32
    %c0_i32_0 = arith.constant 0 : i32
    %c0_i32_1 = arith.constant 0 : i32
    return %arg1, %c0_i32, %c0_i32_0 : i32, i32, i32
  }
  func.func @transform_13(%arg0: i32, %arg1: i32) -> (i32, i32, i32) {
    %c0_i32 = arith.constant 0 : i32
    %c0_i32_0 = arith.constant 0 : i32
    %c0_i32_1 = arith.constant 0 : i32
    return %arg1, %c0_i32, %c0_i32_0 : i32, i32, i32
  }
  func.func @transform_14(%arg0: i32, %arg1: i32) -> (i32, i32, i32) {
    %c0_i32 = arith.constant 0 : i32
    %c0_i32_0 = arith.constant 0 : i32
    %c0_i32_1 = arith.constant 0 : i32
    return %arg1, %c0_i32, %c0_i32_0 : i32, i32, i32
  }
  func.func @transform_15(%arg0: i32, %arg1: i32) -> (i32, i32, i32) {
    %c0_i32 = arith.constant 0 : i32
    %c0_i32_0 = arith.constant 0 : i32
    %c0_i32_1 = arith.constant 0 : i32
    return %arg1, %c0_i32, %c0_i32_0 : i32, i32, i32
  }
  func.func @transform_16(%arg0: i32, %arg1: i32) -> (i32, i32, i32) {
    %c0_i32 = arith.constant 0 : i32
    %c0_i32_0 = arith.constant 0 : i32
    %c0_i32_1 = arith.constant 0 : i32
    return %arg1, %c0_i32, %c0_i32_0 : i32, i32, i32
  }
  func.func @transform_17(%arg0: i32, %arg1: i32) -> (i32, i32) {
    %c0_i32 = arith.constant 0 : i32
    %c0_i32_0 = arith.constant 0 : i32
    return %arg0, %c0_i32 : i32, i32
  }
}

</mosaic_0001>

<bundles_post_ra>
// kernel: vision_transformer_forward.1
= control target key start
LH: loop header
LB: loop body
LE: loop exit
PB: predicated region body
PF: predicated region fallthrough
CT: control target
= control target key end

     0   :  { %s3683_s0 = inlined_call_operand.vmem [shape: f32[2,16,48], index: 0, kind: input, shape index: {}]   ;;  %s3684_s1 = inlined_call_operand.vmem [shape: bf16[48,32], index: 1, kind: input, shape index: {}]   ;;  %s3685_s2 = inlined_call_operand.vmem [shape: f32[1,32], index: 2, kind: input, shape index: {}]   ;;  %s3686_s3 = inlined_call_operand.vmem [shape: f32[1,32], index: 3, kind: input, shape index: {}]   ;;  %s3687_s4 = inlined_call_operand.vmem [shape: f32[17,32], index: 4, kind: input, shape index: {}]   ;;  %s3688_s5 = inlined_call_operand.vmem [shape: f32[2,1,32], index: 5, kind: input, shape index: {}]   ;;  %s3689_s6 = inlined_call_operand.vmem [shape: f32[2,1,32], index: 6, kind: input, shape index: {}]   ;;  %s3690_s7 = inlined_call_operand.vmem [shape: bf16[2,32,96], index: 7, kind: input, shape index: {}]   ;;  %s3691_s8 = inlined_call_operand.vmem [shape: f32[2,1,96], index: 8, kind: input, shape index: {}]   ;;  %s3692_s9 = inlined_call_operand.vmem [shape: bf16[2,32,32], index: 9, kind: input, shape index: {}]   ;;  %s3693_s10 = inlined_call_operand.vmem [shape: f32[2,1,32], index: 10, kind: input, shape index: {}]   ;;  %s3694_s11 = inlined_call_operand.vmem [shape: f32[2,1,32], index: 11, kind: input, shape index: {}]   ;;  %s3695_s12 = inlined_call_operand.vmem [shape: f32[2,1,32], index: 12, kind: input, shape index: {}]   ;;  %s3696_s13 = inlined_call_operand.vmem [shape: bf16[2,32,64], index: 13, kind: input, shape index: {}]   ;;  %s3697_s14 = inlined_call_operand.vmem [shape: f32[2,1,64], index: 14, kind: input, shape index: {}]   ;;  %s3698_s15 = inlined_call_operand.vmem [shape: bf16[2,64,32], index: 15, kind: input, shape index: {}]   ;;  %s3699_s16 = inlined_call_operand.vmem [shape: f32[2,1,32], index: 16, kind: input, shape index: {}]   ;;  %s3700_s17 = inlined_call_operand.hbm [shape: f32[2,32], index: 17, kind: output, shape index: {}]  }
   0x1   :  { %3706 = sst [smem:[#allocation12_spill]] %s3683_s0 }
   0x2   :  { %3707 = sst [smem:[#allocation13_spill]] %s3684_s1 }
   0x3   :  { %3708 = sst [smem:[#allocation14_spill]] %s3688_s5 }
   0x4   :  { %3709 = sst [smem:[#allocation15_spill]] %s3689_s6 }
   0x5   :  { %3710 = sst [smem:[#allocation16_spill]] %s3690_s7 }
   0x6   :  { %3711 = sst [smem:[#allocation17_spill]] %s3692_s9 }
   0x7   :  { %3712 = sst [smem:[#allocation18_spill]] %s3700_s17 }
   0x8   :  { %22 = vsyncpa [#allocation6], 0  ;;  %s2949_s24 = smov 0   ;;  %s2951_s25 = smov 0  }
   0x9   :  { %s2953_s26 = smov 0  }
   0xa LB: > { %3713 = sst [smem:[#allocation8_spill]] %s2831_s25  ;;  %s37_s28 = sadd.s32 1, %s2831_s25  ;;  %s2835_s26 = sphi %s2953_s26, %s28_s26   ;;  %s2831_s25 = sphi %s2951_s25, %s3743_s25   ;;  %s2827_s24 = sphi %s2949_s24, %s3742_s24  }
   0xb   : > { %3714 = sst [smem:[#allocation9_spill]] %s2835_s26  ;;  %p38_p0 = scmp.ge.s32.totalorder %s37_s28, 2 }
   0xc   : > { %p2456_p1 = scmp.ge.s32.totalorder %s2835_s26, 1  ;;  %p606_p2 = scmp.lt.s32.totalorder %s2835_s26, 3 }
   0xd   : > { %s3745_s28 = smov (%p38_p0, %s37_s28), 0 }
   0xe   : > { %3715 = sst [smem:[#allocation10_spill]] %s3745_s28  ;;  %p607_p3 = pnand %p2456_p1, %p606_p2 }
  0x10   : > { %610 = sbr.rel (%p607_p3) target bundleno = 2832 (0xb10), region = 88 }
  0x15   : > { %p705_p4 = scmp.lt.s32.totalorder %s2827_s24, 1  ;;  %s3718_s7 = sld [smem:[#allocation16_spill]] }
  0x16   : > { %s3719_s9 = sld [smem:[#allocation17_spill]]  ;;  %p2465_p5 = scmp.ne.s32.totalorder %s2827_s24, 0 }
  0x17   : > { %s2972_s29 = scalar_select %p705_p4, %s2827_s24, 1 }
  0x18   : > { %s3721_s0 = sld [smem:[#allocation13_spill]] (!%p2465_p5) }
  0x19   : > { %s2571_s21 = sshll.u32 %s2972_s29, 4  ;;  %s748_s22 = scalar_lea.vmem %s3699_s16, %s2972_s29 }
  0x1a   : > { %753 = sbr.rel (%p2465_p5) target bundleno = 188 (0xbc), region = 92  ;;  %s3722_s25 = sld [smem:[#allocation12_spill]] (!%p2465_p5) }
  0x1b   : > { %s2990_s28 = scalar_lea.vmem %s3718_s7, %s2571_s21  ;;  %s3012_s7 = scalar_lea.vmem %s3696_s13, %s2571_s21 }
  0x1c   : > { %s2995_s26 = scalar_lea.vmem %s3719_s9, %s2571_s21 }
  0x1d   : > { %3720 = sst [smem:[#allocation11_spill]] %s2995_s26  ;;  %s2574_s26 = sshll.u32 %s2972_s29, 5 }
  0x1e   : > { %s3022_s19 = scalar_lea.vmem %s3698_s15, %s2574_s26 }
  0x1f   : > { %v2577_v0 = vld [vmem:[%s3721_s0 + $0x10] sm:$0xff]  ;;  %v2576_v4 = vld [vmem:[%s3721_s0 + $0x8] sm:$0xff]  ;;  %v2575_v14 = vld [vmem:[%s3721_s0] sm:$0xff]  ;;  %vm805_vm0 = vcmask 392192   ;;  %vm834_vm1 = vcmask 1046528   ;;  %vm846_vm2 = vcmask 1040384  }
  0x20   : > { %s3723_s9 = smov %s3722_s25  ;;  %v759_v1 = vld [vmem:[%s3722_s25] sm:$0xff]  ;;  %817 = vmatpush.bf16.msra.mxu0 %v2577_v0  ;;  %2592 = vmatpush.bf16.msra.mxu1 %v2577_v0  ;;  %v755_v18 = vld [vmem:[%s3687_s4 + $0x8] sm:$0xff]  ;;  %v756_v28 = vld [vmem:[%s3687_s4 + $0x10] sm:$0x1]  ;;  %vm855_vm3 = vcmask 261120  }
  0x21   : > { %v760_v2 = vld [vmem:[%s3723_s9 + $0x8] sm:$0xff]  ;;  %v761_v3 = vld [vmem:[%s3723_s9 + $0x10] sm:$0xff]  ;;  %v763_v5 = vpack.c.bf16 %v759_v1, %v759_v1  ;;  %v762_v7 = vld [vmem:[%s3723_s9 + $0x18] sm:$0xff]  ;;  %v836_v20 = vrot.slane %v755_v18, 1  ;;  %v838_v32 = vrot.slane %v756_v28, 1 }
  0x22   : > { %v764_v6 = vpack.c.bf16 %v760_v2, %v760_v2  ;;  %v765_v8 = vpack.c.bf16 %v761_v3, %v761_v3  ;;  %v766_v9 = vpack.c.bf16 %v762_v7, %v762_v7  ;;  %v754_v17 = vld [vmem:[%s3687_s4] sm:$0xff] }
  0x23   : > { %v781_v10 = vunpack.c.l.b16 %v763_v5  ;;  %v835_v19 = vrot.slane %v754_v17, 1  ;;  %v2659_v21 = vld [vmem:[%s3685_s2] ss:$0 sm:$0xff]  ;;  %v839_v38 = vsel %vm834_vm1, %v836_v20, %v838_v32 }
  0x24   : > { %v782_v11 = vunpack.c.l.b16 %v764_v6  ;;  %v783_v12 = vunpack.c.l.b16 %v765_v8  ;;  %v784_v13 = vunpack.c.l.b16 %v766_v9  ;;  %818 = vmatpush.bf16.msra.mxu0 %v2576_v4  ;;  %2593 = vmatpush.bf16.msra.mxu1 %v2576_v4  ;;  %v757_v22 = vld [vmem:[%s3686_s3] sm:$0x1] }
  0x25   : > { %v837_v24 = vsel %vm834_vm1, %v835_v19, %v836_v20  ;;  %v758_v29 = vadd.f32 %v757_v22, %v754_v17 }
  0x26   : > { %v785_v15 = vpack.c.b16 %v782_v11, %v781_v10  ;;  %v786_v16 = vpack.c.b16 %v784_v13, %v783_v12 }
  0x28   : > { %819 = vmatpush.bf16.msra.mxu0 %v2575_v14  ;;  %2594 = vmatpush.bf16.msra.mxu1 %v2575_v14 }
  0x2b   : > { %2478 = vmatmul.msk.bf16.vlgmr.msra.gmra.mxu0 %vm805_vm0, %v785_v15  ;;  %2479 = vmatmul.msk.bf16.vlgmr.msra.gmra.mxu1 %vm805_vm0, %v786_v16 }
  0xa8   : > { %v821_v23 = vpop.f32.mrf.mxu0  ;;  %v826_v25 = vpop.f32.mrf.mxu1 }
  0xa9   : > { %v822_v26 = vadd.f32 %v2659_v21, %v821_v23  ;;  %v827_v27 = vadd.f32 %v2659_v21, %v826_v25 }
  0xab   : > { %v842_v30 = vadd.f32 %v837_v24, %v822_v26  ;;  %v859_v31 = vadd.f32 %v837_v24, %v827_v27 }
  0xad   : > { %v847_v33 = vrot.slane %v842_v30, 7  ;;  %v863_v34 = vrot.slane %v859_v31, 7 }
  0xaf   : > { %v853_v35 = vsel %vm846_vm2, %v758_v29, %v847_v33  ;;  %v869_v36 = vsel %vm846_vm2, %v758_v29, %v863_v34 }
  0xb0   : > { %856 = vst.msk [vmem:[#allocation2] sm:$0xff] %vm855_vm3, %v853_v35  ;;  %v823_v37 = vpop.f32.mrf.mxu0  ;;  %v828_v39 = vpop.f32.mrf.mxu1 }
  0xb1   : > { %871 = vst.msk [vmem:[#allocation2 + $0x18] sm:$0xff] %vm855_vm3, %v869_v36  ;;  %v824_v40 = vadd.f32 %v2659_v21, %v823_v37  ;;  %v829_v41 = vadd.f32 %v2659_v21, %v828_v39 }
  0xb3   : > { %v843_v42 = vadd.f32 %v839_v38, %v824_v40  ;;  %v860_v43 = vadd.f32 %v839_v38, %v829_v41 }
  0xb5   : > { %v848_v44 = vrot.slane %v843_v42, 7  ;;  %v864_v45 = vrot.slane %v860_v43, 7 }
  0xb7   : > { %v849_v46 = vsel %vm846_vm2, %v847_v33, %v848_v44  ;;  %v854_v47 = vsel %vm846_vm2, %v848_v44, 0.0  ;;  %v865_v48 = vsel %vm846_vm2, %v863_v34, %v864_v45  ;;  %v870_v49 = vsel %vm846_vm2, %v864_v45, 0.0 }
  0xb8   : > { %857 = vst.msk [vmem:[#allocation2 + $0x8] sm:$0xff] %vm855_vm3, %v849_v46 }
  0xb9   : > { %858 = vst.msk [vmem:[#allocation2 + $0x10] sm:$0xff] %vm855_vm3, %v854_v47 }
  0xba   : > { %872 = vst.msk [vmem:[#allocation2 + $0x20] sm:$0xff] %vm855_vm3, %v865_v48 }
  0xbb   : > { %873 = vst.msk [vmem:[#allocation2 + $0x28] sm:$0xff] %vm855_vm3, %v870_v49 }
  0xbc PF: > { %vm887_vm4 = vcmask 261120   ;;  %v3083_v52 = vld [vmem:[#allocation2] sm:$0xff]  ;;  %v3093_v57 = vld [vmem:[#allocation2 + $0x18] sm:$0xff]  ;;  %v2841_v62 = vmov 32.0   ;;  %v2579_v36 = vld [vmem:[%s2990_s28 + $0x8] sm:$0xff]  ;;  %s3724_s21 = scalar_lea.vmem %s3694_s11, %s2972_s29  ;;  %s3725_s25 = scalar_lea.vmem %s3695_s12, %s2972_s29 }
  0xbd   : > { %v888_v55 = vsel %vm887_vm4, %v3083_v52, 0.0  ;;  %v897_v60 = vsel %vm887_vm4, %v3093_v57, 0.0  ;;  %2663 = vrcp.f32 %v2841_v62  ;;  %1082 = vmatpush.bf16.msra.mxu0 %v2579_v36  ;;  %2596 = vmatpush.bf16.msra.mxu2 %v2579_v36  ;;  %v2578_v42 = vld [vmem:[%s2990_s28] sm:$0xff]  ;;  %s3726_s28 = scalar_lea.vmem %s3693_s10, %s2972_s29  ;;  %s3729_s23 = sld [smem:[#allocation14_spill]] }
  0xbe   : > { %889 = vadd.xlane.f32.xlu1 %v888_v55  ;;  %2595 = vmatpush.bf16.msra.mxu1 %v2579_v36  ;;  %v3156_v43 = vld [vmem:[%s3724_s21] sm:$0x1]  ;;  %s3733_s30 = sld [smem:[#allocation15_spill]]  ;;  %s3735_s5 = scalar_lea.vmem %s3691_s8, %s2972_s29 }
  0xbf   : > { %v3095_v58 = vld [vmem:[#allocation2 + $0x8] sm:$0xff]  ;;  %v3163_v44 = vld [vmem:[%s3725_s25] sm:$0x1] }
  0xc0   : > { %v3081_v51 = vld [vmem:[#allocation2 + $0x10] sm:$0xff]  ;;  %v891_v61 = vsel %vm887_vm4, %v3095_v58, 0.0  ;;  %v3170_v45 = vld [vmem:[%s3726_s28] sm:$0x1]  ;;  %s3229_s28 = smov 0  }
  0xc1   : > { %v3079_v50 = vld [vmem:[#allocation2 + $0x20] sm:$0xff]  ;;  %v894_v54 = vsel %vm887_vm4, %v3081_v51, 0.0  ;;  %1083 = vmatpush.bf16.msra.mxu0 %v2578_v42  ;;  %2598 = vmatpush.bf16.msra.mxu2 %v2578_v42 }
  0xc2   : > { %v900_v53 = vsel %vm887_vm4, %v3079_v50, 0.0  ;;  %895 = vadd.xlane.f32.xlu2 %v894_v54  ;;  %v3091_v56 = vld [vmem:[#allocation2 + $0x28] sm:$0xff]  ;;  %2597 = vmatpush.bf16.msra.mxu1 %v2578_v42  ;;  %v3177_v47 = vld [vmem:[%s748_s22] sm:$0x1] }
  0xc3   : > { %901 = vadd.xlane.f32.xlu0 %v900_v53  ;;  %v903_v59 = vsel %vm887_vm4, %v3091_v56, 0.0  ;;  %v2664_v63 = vpop.eup %2663  ;;  %s3730_s6 = scalar_lea.vmem %s3729_s23, %s2972_s29 }
  0xc4   : > { %v907_v0 = vmul.f32 32.0, %v2664_v63  ;;  %vm911_vm5 = vweird.f32 %v2664_v63  ;;  %s3734_s17 = scalar_lea.vmem %s3733_s30, %s2972_s29 }
  0xc6   : > { %892 = vadd.xlane.f32.xlu1 %v891_v61  ;;  %v908_v1 = vsub.f32 1.0, %v907_v0 }
  0xc8   : > { %v909_v2 = vmul.f32 %v2664_v63, %v908_v1 }
  0xca   : > { %898 = vadd.xlane.f32.xlu2 %v897_v60  ;;  %v910_v3 = vadd.f32 %v2664_v63, %v909_v2 }
  0xcb   : > { %904 = vadd.xlane.f32.xlu0 %v903_v59 }
  0xcc   : > { %v3103_v4 = vsel %vm911_vm5, %v2664_v63, %v910_v3 }
 0x131   : > { %v890_v8 = vpop.xlane.xlu1 %889 }
 0x132   : > { %v913_v9 = vmul.f32 %v3103_v4, %v890_v8 }
 0x134   : > { %v3111_v11 = vsub.f32 %v3083_v52, %v913_v9 }
 0x135   : > { %v896_v6 = vpop.xlane.xlu2 %895 }
 0x136   : > { %v902_v5 = vpop.xlane.xlu0 %901  ;;  %v925_v13 = vmul.f32 %v3111_v11, %v3111_v11  ;;  %v915_v22 = vmul.f32 %v3103_v4, %v896_v6 }
 0x137   : > { %v917_v7 = vmul.f32 %v3103_v4, %v902_v5 }
 0x138   : > { %v931_v17 = vsel %vm887_vm4, %v925_v13, 0.0  ;;  %v3139_v29 = vsub.f32 %v3081_v51, %v915_v22 }
 0x139   : > { %v3108_v10 = vsub.f32 %v3079_v50, %v917_v7  ;;  %932 = vadd.xlane.f32.xlu2 %v931_v17  ;;  %v893_v20 = vpop.xlane.xlu1 %892 }
 0x13a   : > { %v914_v21 = vmul.f32 %v3103_v4, %v893_v20  ;;  %v927_v33 = vmul.f32 %v3139_v29, %v3139_v29 }
 0x13b   : > { %v929_v12 = vmul.f32 %v3108_v10, %v3108_v10 }
 0x13c   : > { %v3130_v25 = vsub.f32 %v3095_v58, %v914_v21  ;;  %v937_v34 = vsel %vm887_vm4, %v927_v33, 0.0 }
 0x13d   : > { %v943_v14 = vsel %vm887_vm4, %v929_v12, 0.0  ;;  %v899_v16 = vpop.xlane.xlu2 %898 }
 0x13e   : > { %944 = vadd.xlane.f32.xlu0 %v943_v14  ;;  %v905_v15 = vpop.xlane.xlu0 %904  ;;  %v916_v19 = vmul.f32 %v3103_v4, %v899_v16  ;;  %v926_v28 = vmul.f32 %v3130_v25, %v3130_v25 }
 0x13f   : > { %v918_v18 = vmul.f32 %v3103_v4, %v905_v15 }
 0x140   : > { %v3127_v24 = vsub.f32 %v3093_v57, %v916_v19  ;;  %v934_v32 = vsel %vm887_vm4, %v926_v28, 0.0 }
 0x141   : > { %v3124_v23 = vsub.f32 %v3091_v56, %v918_v18 }
 0x142   : > { %v928_v27 = vmul.f32 %v3127_v24, %v3127_v24 }
 0x143   : > { %v930_v26 = vmul.f32 %v3124_v23, %v3124_v23 }
 0x144   : > { %v940_v31 = vsel %vm887_vm4, %v928_v27, 0.0 }
 0x145   : > { %v946_v30 = vsel %vm887_vm4, %v930_v26, 0.0  ;;  %941 = vadd.xlane.f32.xlu2 %v940_v31 }
 0x146   : > { %947 = vadd.xlane.f32.xlu1 %v946_v30  ;;  %935 = vadd.xlane.f32.xlu0 %v934_v32 }
 0x14e   : > { %938 = vadd.xlane.f32.xlu1 %v937_v34 }
 0x1ac   : > { %v933_v38 = vpop.xlane.xlu2 %932 }
 0x1ad   : > { %v949_v39 = vmul.f32 %v933_v38, %v3103_v4 }
 0x1af   : > { %v955_v41 = vadd.f32 1e-05, %v949_v39  ;;  %v2660_v39 = vld [vmem:[%s3730_s6] ss:$0 sm:$0xff] }
 0x1b1   : > { %v945_v35 = vpop.xlane.xlu0 %944  ;;  %vm967_vm8 = vweird.f32 %v955_v41 }
 0x1b2   : > { %v953_v37 = vmul.f32 %v945_v35, %v3103_v4 }
 0x1b4   : > { %v959_v40 = vadd.f32 1e-05, %v953_v37 }
 0x1b6   : > { %2665 = vrsqrt.f32 %v959_v40  ;;  %vm1007_vm7 = vweird.f32 %v959_v40 }
 0x1b7   : > { %2667 = vrsqrt.f32 %v955_v41 }
 0x1b8   : > { %v942_v48 = vpop.xlane.xlu2 %941 }
 0x1b9   : > { %v948_v46 = vpop.xlane.xlu1 %947  ;;  %v936_v49 = vpop.xlane.xlu0 %935  ;;  %v952_v54 = vmul.f32 %v942_v48, %v3103_v4 }
 0x1ba   : > { %v954_v53 = vmul.f32 %v948_v46, %v3103_v4  ;;  %v950_v55 = vmul.f32 %v936_v49, %v3103_v4 }
 0x1bb   : > { %v958_v63 = vadd.f32 1e-05, %v952_v54 }
 0x1bc   : > { %v2666_v59 = vpop.eup %2665  ;;  %v960_v60 = vadd.f32 1e-05, %v954_v53  ;;  %v956_v0 = vadd.f32 1e-05, %v950_v55 }
 0x1bd   : > { %v2668_v61 = vpop.eup %2667  ;;  %v1002_v62 = vmul.f32 %v2666_v59, %v959_v40  ;;  %vm1008_vm6 = vweird.f32 %v2666_v59  ;;  %vm997_vm12 = vweird.f32 %v958_v63 }
 0x1be   : > { %v962_v1 = vmul.f32 %v2668_v61, %v955_v41  ;;  %2669 = vrsqrt.f32 %v960_v60  ;;  %vm968_vm9 = vweird.f32 %v2668_v61  ;;  %vm1009_vm10 = vmor %vm1007_vm7, %vm1008_vm6  ;;  %vm1017_vm13 = vweird.f32 %v960_v60 }
 0x1bf   : > { %v1003_v2 = vmul.f32 %v2666_v59, %v1002_v62  ;;  %2671 = vrsqrt.f32 %v958_v63  ;;  %vm3183_vm11 = vmor %vm967_vm8, %vm968_vm9  ;;  %vm977_vm0 = vweird.f32 %v956_v0 }
 0x1c0   : > { %v963_v3 = vmul.f32 %v2668_v61, %v962_v1  ;;  %2673 = vrsqrt.f32 %v956_v0 }
 0x1c1   : > { %v1004_v5 = vmul.f32 0.5, %v1003_v2  ;;  %v939_v6 = vpop.xlane.xlu1 %938 }
 0x1c2   : > { %v964_v7 = vmul.f32 0.5, %v963_v3  ;;  %v951_v8 = vmul.f32 %v939_v6, %v3103_v4 }
 0x1c3   : > { %v1005_v9 = vsub.f32 1.5, %v1004_v5 }
 0x1c4   : > { %v2670_v12 = vpop.eup %2669  ;;  %v965_v13 = vsub.f32 1.5, %v964_v7  ;;  %v957_v14 = vadd.f32 1e-05, %v951_v8 }
 0x1c5   : > { %v2672_v15 = vpop.eup %2671  ;;  %v1006_v16 = vmul.f32 %v2666_v59, %v1005_v9  ;;  %v1012_v17 = vmul.f32 %v2670_v12, %v960_v60  ;;  %vm1018_vm14 = vweird.f32 %v2670_v12 }
 0x1c6   : > { %v2674_v18 = vpop.eup %2673  ;;  %v992_v19 = vmul.f32 %v2672_v15, %v958_v63  ;;  %2675 = vrsqrt.f32 %v957_v14  ;;  %v966_v20 = vmul.f32 %v2668_v61, %v965_v13  ;;  %vm998_vm15 = vweird.f32 %v2672_v15  ;;  %vm1019_vm2 = vmor %vm1017_vm13, %vm1018_vm14 }
 0x1c7   : > { %v972_v21 = vmul.f32 %v2674_v18, %v956_v0  ;;  %v1013_v22 = vmul.f32 %v2670_v12, %v1012_v17  ;;  %v1010_v27 = vsel %vm1009_vm10, %v2666_v59, %v1006_v16  ;;  %vm978_vm1 = vweird.f32 %v2674_v18  ;;  %vm3198_vm3 = vmor %vm997_vm12, %vm998_vm15  ;;  %v2661_v59 = vld [vmem:[%s3734_s17] ss:$0 sm:$0xff] }
 0x1c8   : > { %v993_v26 = vmul.f32 %v2672_v15, %v992_v19  ;;  %v970_v33 = vsel %vm3183_vm11, %v2668_v61, %v966_v20  ;;  %v1025_v37 = vmul.f32 %v1010_v27, %v3108_v10  ;;  %vm979_vm5 = vmor %vm977_vm0, %vm978_vm1  ;;  %vm987_vm7 = vweird.f32 %v957_v14 }
 0x1c9   : > { %v973_v28 = vmul.f32 %v2674_v18, %v972_v21  ;;  %v1014_v30 = vmul.f32 0.5, %v1013_v22  ;;  %v1021_v46 = vmul.f32 %v970_v33, %v3111_v11  ;;  %v2842_v21 = vmov -1e+30  }
 0x1ca   : > { %v994_v32 = vmul.f32 0.5, %v993_v26  ;;  %v1034_v11 = vmul.f32 %v2660_v39, %v1025_v37  ;;  %vm1106_vm10 = vcmask 781312  }
 0x1cb   : > { %v974_v34 = vmul.f32 0.5, %v973_v28  ;;  %v1015_v35 = vsub.f32 1.5, %v1014_v30  ;;  %v1030_v0 = vmul.f32 %v2660_v39, %v1021_v46 }
 0x1cc   : > { %v2676_v36 = vpop.eup %2675  ;;  %v995_v38 = vsub.f32 1.5, %v994_v32  ;;  %v1043_v5 = vadd.f32 %v2661_v59, %v1034_v11 }
 0x1cd   : > { %v975_v40 = vsub.f32 1.5, %v974_v34  ;;  %v1016_v41 = vmul.f32 %v2670_v12, %v1015_v35  ;;  %v982_v42 = vmul.f32 %v2676_v36, %v957_v14  ;;  %vm988_vm6 = vweird.f32 %v2676_v36 }
 0x1ce   : > { %v996_v48 = vmul.f32 %v2672_v15, %v995_v38  ;;  %vm989_vm8 = vmor %vm987_vm7, %vm988_vm6  ;;  %v1039_v8 = vadd.f32 %v2661_v59, %v1030_v0  ;;  %v1113_v14 = vlaneseq }
 0x1cf   : > { %v976_v49 = vmul.f32 %v2674_v18, %v975_v40  ;;  %v1020_v53 = vsel %vm1019_vm2, %v2670_v12, %v1016_v41  ;;  %v983_v54 = vmul.f32 %v2676_v36, %v982_v42 }
 0x1d0   : > { %v1026_v55 = vmul.f32 %v1020_v53, %v3124_v23  ;;  %v1000_v60 = vsel %vm3198_vm3, %v2672_v15, %v996_v48  ;;  %v1114_v20 = vand.u32 127, %v1113_v14 }
 0x1d1   : > { %v980_v61 = vsel %vm979_vm5, %v2674_v18, %v976_v49  ;;  %v984_v62 = vmul.f32 0.5, %v983_v54  ;;  %v1024_v3 = vmul.f32 %v1000_v60, %v3127_v24 }
 0x1d2   : > { %v1022_v63 = vmul.f32 %v980_v61, %v3130_v25  ;;  %v1035_v1 = vmul.f32 %v2660_v39, %v1026_v55  ;;  %vm1115_vm9 = vcmp.lt.s32.totalorder %v1114_v20, 17 }
 0x1d3   : > { %v985_v2 = vsub.f32 1.5, %v984_v62  ;;  %v1033_v16 = vmul.f32 %v2660_v39, %v1024_v3  ;;  %v3216_v22 = vsel %vm1115_vm9, 0.0, %v2842_v21 }
 0x1d4   : > { %v1031_v23 = vmul.f32 %v2660_v39, %v1022_v63  ;;  %v1044_v6 = vadd.f32 %v2661_v59, %v1035_v1 }
 0x1d5   : > { %v986_v7 = vmul.f32 %v2676_v36, %v985_v2  ;;  %v1042_v18 = vadd.f32 %v2661_v59, %v1033_v16 }
 0x1d6   : > { %v1040_v9 = vadd.f32 %v2661_v59, %v1031_v23  ;;  %v1047_v12 = vpack.c.bf16 %v1044_v6, %v1043_v5 }
 0x1d7   : > { %v990_v13 = vsel %vm989_vm8, %v2676_v36, %v986_v7 }
 0x1d8   : > { %v1023_v15 = vmul.f32 %v990_v13, %v3139_v29  ;;  %v1045_v25 = vpack.c.bf16 %v1040_v9, %v1039_v8  ;;  %2490 = vmatmul.msk.bf16.vlgmr.msra.gmra.mxu2 %vm887_vm4, %v1047_v12  ;;  %v2662_v29 = vld [vmem:[%s3735_s5] ss:$0 sm:$0xff] }
 0x1da   : > { %2488 = vmatmul.msk.bf16.vlgmr.msra.gmra.mxu0 %vm887_vm4, %v1045_v25  ;;  %v1032_v24 = vmul.f32 %v2660_v39, %v1023_v15 }
 0x1dc   : > { %v1041_v17 = vadd.f32 %v2661_v59, %v1032_v24 }
 0x1de   : > { %v1046_v19 = vpack.c.bf16 %v1042_v18, %v1041_v17 }
 0x1e0   : > { %2489 = vmatmul.msk.bf16.vlgmr.msra.gmra.mxu1 %vm887_vm4, %v1046_v19 }
 0x257   : > { %v1085_v26 = vpop.f32.mrf.mxu0 }
 0x258   : > { %v1086_v27 = vadd.f32 %v2662_v29, %v1085_v26 }
 0x25a   : > { %v1100_v28 = vpack.c.bf16 %v1086_v27, %v1086_v27 }
 0x25b   : > { %v1095_v30 = vpop.f32.mrf.mxu2 }
 0x25c   : > { %1107 = vst.msk [vmem:[#allocation3] sm:$0xf] %vm1106_vm10, %v1100_v28  ;;  %v1096_v31 = vadd.f32 %v2662_v29, %v1095_v30 }
 0x25d   : > { %v1090_v32 = vpop.f32.mrf.mxu1 }
 0x25e   : > { %v1104_v33 = vpack.c.bf16 %v1096_v31, %v1096_v31  ;;  %v1091_v34 = vadd.f32 %v2662_v29, %v1090_v32 }
 0x25f   : > { %v1087_v35 = vpop.f32.mrf.mxu0 }
 0x260   : > { %1111 = vst.msk [vmem:[#allocation3 + $0x10] sm:$0xf] %vm1106_vm10, %v1104_v33  ;;  %v1088_v36 = vadd.f32 %v2662_v29, %v1087_v35  ;;  %v1102_v37 = vpack.c.bf16 %v1091_v34, %v1091_v34 }
 0x262   : > { %v1101_v38 = vpack.c.bf16 %v1088_v36, %v1088_v36  ;;  %1109 = vst.msk [vmem:[#allocation3 + $0x8] sm:$0xf] %vm1106_vm10, %v1102_v37 }
 0x263   : > { %v1097_v39 = vpop.f32.mrf.mxu2 }
 0x264   : > { %1108 = vst.msk [vmem:[#allocation3 + $0x4] sm:$0xf] %vm1106_vm10, %v1101_v38  ;;  %v1098_v40 = vadd.f32 %v2662_v29, %v1097_v39 }
 0x265   : > { %v1092_v41 = vpop.f32.mrf.mxu1 }
 0x266   : > { %v1105_v42 = vpack.c.bf16 %v1098_v40, %v1098_v40  ;;  %v1093_v46 = vadd.f32 %v2662_v29, %v1092_v41 }
 0x268   : > { %1112 = vst.msk [vmem:[#allocation3 + $0x14] sm:$0xf] %vm1106_vm10, %v1105_v42  ;;  %v1103_v48 = vpack.c.bf16 %v1093_v46, %v1093_v46 }
 0x26a   : > { %1110 = vst.msk [vmem:[#allocation3 + $0xc] sm:$0xf] %vm1106_vm10, %v1103_v48 }
 0x26b LB: >> { %s1123_s18 = smul.u32 24, %s2839_s28  ;;  %s2843_s23 = smov 96   ;;  %vm1143_vm11 = vcmask 64512   ;;  %vm1174_vm12 = vcmask 195584   ;;  %vm1221_vm13 = vcmask 1043456   ;;  %vm1597_vm14 = vcmask 130048   ;;  %s2839_s28 = sphi %s3229_s28, %s1122_s28  }
 0x26c   : >> { %s2844_s6 = smov 88   ;;  %s2845_s27 = smov 120   ;;  %vm1609_vm15 = vcmask 257024  }
 0x26d   : >> { %s3235_s20 = sshra.s32 %s1123_s18, 3  ;;  %s2846_s21 = smov 64  }
 0x26e   : >> { %s2491_s22 = sshll.u32 %s3235_s20, 2  ;;  %s2847_s30 = smov 80  }
 0x26f   : >> { %s1127_s1 = scalar_lea.vmem [#allocation3], %s2491_s22  ;;  %s2848_s17 = smov 72  }
 0x270   : >> { %s2849_s25 = smov 104   ;;  %s2850_s26 = smov 112  }
 0x271   : >> { %v1130_v10 = vld [vmem:[%s1127_s1 + $0x8] sm:$0xf]  ;;  %v3243_v54 = vld [vmem:[%s1127_s1] sm:$0xff]  ;;  %s2851_s5 = smov 56   ;;  %s2852_s18 = smov 48  }
 0x272   : >> { %v1136_v49 = vunpack.c.l.b16 %v1130_v10  ;;  %s2853_s1 = smov 40   ;;  %s1122_s28 = sadd.s32 1, %s2839_s28  }
 0x273   : >> { %p1119_p6 = scmp.ge.s32.totalorder %s1122_s28, 2  }
 0x274   : >> { %v3240_v53 = vpack.c.b16 %v1136_v49, %v1136_v49  ;;  %s3736_s20 = sld [smem:[#allocation11_spill]] (%p1119_p6)  ;;  %p2566_p7 = scmp.ne.s32.totalorder (%p1119_p6), %s2827_s24, 1 }
 0x276   : >> { %1141 = vrot.lane.b32.xlu0 %v3240_v53, %s2843_s23  ;;  %1249 = vrot.lane.b32.xlu2 %v3240_v53, %s2844_s6 }
 0x27e   : >> { %1139 = vrot.lane.b32.xlu0 %v3243_v54, %s2843_s23  ;;  %1243 = vrot.lane.b32.xlu2 %v3243_v54, %s2845_s27  ;;  %s2854_s23 = smov 8  }
 0x286   : >> { %1247 = vrot.lane.b32.xlu0 %v3243_v54, %s2844_s6  ;;  %s2855_s6 = smov 24  }
 0x2d0   : >> { %v1250_v61 = vpop.permute.xlu2 %1249 }
 0x2d1   : >> { %v1261_v62 = vsel %vm1143_vm11, %v1250_v61, 0 }
 0x2d2   : >> { %1269 = vmatpush.bf16.xpose.msra.mxu2 %v1261_v62 }
 0x2d8   : >> { %v1244_v3 = vpop.permute.xlu2 %1243 }
 0x2e8   : >> { %v1142_v55 = vpop.permute.xlu0 %1141 }
 0x2e9   : >> { %v1154_v59 = vsel %vm1143_vm11, %v1142_v55, 0 }
 0x2ea   : >> { %1162 = vmatpush.bf16.xpose.msra.mxu0 %v1154_v59 }
 0x2f0   : >> { %v1140_v11 = vpop.permute.xlu0 %1139 }
 0x2f1   : >> { %v1151_v60 = vsel %vm1143_vm11, %v1140_v11, 0 }
 0x2f2   : >> { %1163 = vmatpush.bf16.xpose.msra.mxu0 %v1151_v60 }
 0x2f8   : >> { %v1248_v63 = vpop.permute.xlu0 %1247 }
 0x2f9   : >> { %2496 = vmatmul.msk.bf16.vlgmr.msra.gmra.mxu0 %vm1143_vm11, %v3243_v54  ;;  %v1258_v0 = vsel %vm1143_vm11, %v1248_v63, 0 }
 0x2fa   : >> { %1270 = vmatpush.bf16.xpose.msra.mxu2 %v1258_v0 }
 0x301   : >> { %2500 = vmatmul.msk.bf16.vlgmr.msra.gmra.mxu2 %vm1143_vm11, %v1244_v3 }
 0x309   : >> { %2497 = vmatmul.msk.bf16.gmra.mxu0 %vm1143_vm11, %v3240_v53 }
 0x376   : >> { %v1165_v1 = vpop.f32.mrf.mxu0 }
 0x377   : >> { %v1166_v2 = vadd.f32 %v1165_v1, %v3216_v22 }
 0x379   : >> { %v1175_v23 = vsel %vm1174_vm12, %v1166_v2, -inf }
 0x37a   : >> { %1176 = vmax.xlane.f32.xlu1 %v1175_v23 }
 0x37e   : >> { %v1167_v5 = vpop.f32.mrf.mxu0 }
 0x37f   : >> { %v1168_v6 = vadd.f32 %v1167_v5, %v3216_v22 }
 0x381   : >> { %v1178_v7 = vsel %vm1174_vm12, %v1168_v6, -inf }
 0x382   : >> { %1179 = vmax.xlane.f32.xlu1 %v1178_v7 }
 0x384   : >> { %v1272_v33 = vpop.f32.mrf.mxu2 }
 0x385   : >> { %v3282_v34 = vadd.f32 %v1272_v33, %v3216_v22 }
 0x386   : >> { %v1170_v8 = vpop.f32.mrf.mxu0 }
 0x387   : >> { %v1171_v9 = vadd.f32 %v1170_v8, %v3216_v22  ;;  %v1281_v35 = vsel %vm1174_vm12, %v3282_v34, -inf }
 0x389   : >> { %v1181_v12 = vsel %vm1174_vm12, %v1171_v9, -inf }
 0x38a   : >> { %1182 = vmax.xlane.f32.xlu2 %v1181_v12 }
 0x38c   : >> { %v1274_v37 = vpop.f32.mrf.mxu2 }
 0x38d   : >> { %v1275_v38 = vadd.f32 %v1274_v37, %v3216_v22 }
 0x38e   : >> { %v1172_v13 = vpop.f32.mrf.mxu0 }
 0x38f   : >> { %v1284_v39 = vsel %vm1174_vm12, %v1275_v38, -inf }
 0x39b   : >> { %1212 = vrot.lane.b32.xlu1 %v3240_v53, %s2846_s21 }
 0x3a2   : >> { %1210 = vrot.lane.b32.xlu2 %v3243_v54, %s2846_s21  ;;  %s1608_s21 = scalar_lea.vmem [#allocation4], %s2491_s22  ;;  %s3737_s22 = scalar_lea.vmem (%p1119_p6), %s3697_s14, %s2972_s29 }
 0x3ed   : >> { %v1177_v15 = vpop.xlane.xlu1 %1176 }
 0x3ee   : >> { %v1184_v25 = vsub.f32 %v1166_v2, %v1177_v15 }
 0x3f0   : >> { %v1187_v16 = vmul.f32 1.442695, %v1184_v25 }
 0x3f2   : >> { %2692 = vpow2.f32 %v1187_v16 }
 0x3f5   : >> { %v1180_v24 = vpop.xlane.xlu1 %1179 }
 0x3f6   : >> { %v1185_v17 = vsub.f32 %v1168_v6, %v1180_v24 }
 0x3f8   : >> { %v2693_v18 = vpop.eup %2692  ;;  %v1189_v19 = vmul.f32 1.442695, %v1185_v17 }
 0x3f9   : >> { %v1193_v14 = vsel %vm1174_vm12, %v2693_v18, 0.0 }
 0x3fa   : >> { %2694 = vpow2.f32 %v1189_v19  ;;  %1194 = vadd.xlane.f32.xlu1 %v1193_v14 }
 0x3fd   : >> { %v1183_v20 = vpop.xlane.xlu2 %1182 }
 0x3fe   : >> { %v1186_v21 = vsub.f32 %v1171_v9, %v1183_v20 }
 0x400   : >> { %v2695_v29 = vpop.eup %2694  ;;  %v1191_v26 = vmul.f32 1.442695, %v1186_v21 }
 0x401   : >> { %v1196_v27 = vsel %vm1174_vm12, %v2695_v29, 0.0 }
 0x402   : >> { %2696 = vpow2.f32 %v1191_v26  ;;  %1197 = vadd.xlane.f32.xlu0 %v1196_v27 }
 0x405   : >> { %v1211_v36 = vpop.permute.xlu2 %1210 }
 0x408   : >> { %v2697_v28 = vpop.eup %2696 }
 0x409   : >> { %v1199_v30 = vsel %vm1174_vm12, %v2697_v28, 0.0 }
 0x40a   : >> { %1200 = vadd.xlane.f32.xlu2 %v1199_v30 }
 0x40d   : >> { %v1213_v31 = vpop.permute.xlu1 %1212 }
 0x40e   : >> { %v1223_v32 = vsel %vm1221_vm13, %v1213_v31, 0 }
 0x40f   : >> { %1231 = vmatpush.bf16.msra.mxu1 %v1223_v32 }
 0x413   : >> { %1354 = vrot.lane.b32.xlu1 %v3240_v53, %s2847_s30  ;;  %1232 = vmatpush.bf16.msra.mxu1 %v1211_v36 }
 0x416   : >> { %1352 = vrot.lane.b32.xlu0 %v3243_v54, %s2847_s30 }
 0x41b   : >> { %1459 = vrot.lane.b32.xlu1 %v3240_v53, %s2848_s17 }
 0x41e   : >> { %1453 = vrot.lane.b32.xlu0 %v3243_v54, %s2849_s25 }
 0x422   : >> { %1455 = vrot.lane.b32.xlu2 %v3240_v53, %s2849_s25 }
 0x423   : >> { %1245 = vrot.lane.b32.xlu1 %v3240_v53, %s2845_s27  ;;  %s2856_s27 = smov 16  }
 0x42b   : >> { %1457 = vrot.lane.b32.xlu1 %v3243_v54, %s2848_s17 }
 0x433   : >> { %1348 = vrot.lane.b32.xlu1 %v3243_v54, %s2850_s26 }
 0x43b   : >> { %1350 = vrot.lane.b32.xlu1 %v3240_v53, %s2850_s26 }
 0x448   : >> { %1282 = vmax.xlane.f32.xlu0 %v1281_v35 }
 0x465   : >> { %1285 = vmax.xlane.f32.xlu1 %v1284_v39 }
 0x46d   : >> { %v1195_v40 = vpop.xlane.xlu1 %1194 }
 0x46e   : >> { %2698 = vrcp.f32 %v1195_v40 }
 0x474   : >> { %v2699_v42 = vpop.eup %2698 }
 0x475   : >> { %v1198_v41 = vpop.xlane.xlu0 %1197  ;;  %v1205_v48 = vmul.f32 %v2699_v42, %v2693_v18 }
 0x476   : >> { %2700 = vrcp.f32 %v1198_v41 }
 0x47c   : >> { %v2701_v46 = vpop.eup %2700 }
 0x47d   : >> { %v1206_v10 = vmul.f32 %v2701_v46, %v2695_v29  ;;  %v1201_v49 = vpop.xlane.xlu2 %1200 }
 0x47e   : >> { %2702 = vrcp.f32 %v1201_v49 }
 0x47f   : >> { %v1208_v55 = vpack.c.bf16 %v1206_v10, %v1205_v48 }
 0x481   : >> { %2498 = vmatmul.msk.bf16.vlgmr.msra.gmra.mxu1 %vm1174_vm12, %v1208_v55 }
 0x484   : >> { %v2703_v60 = vpop.eup %2702 }
 0x485   : >> { %v1355_v59 = vpop.permute.xlu1 %1354  ;;  %v1207_v61 = vmul.f32 %v2703_v60, %v2697_v28  ;;  %v1456_v8 = vpop.permute.xlu2 %1455 }
 0x486   : >> { %v1366_v11 = vsel %vm1143_vm11, %v1355_v59, 0 }
 0x487   : >> { %1374 = vmatpush.bf16.xpose.msrb.mxu1 %v1366_v11  ;;  %v1209_v2 = vpack.c.bf16 %v1207_v61, %v1207_v61 }
 0x488   : >> { %v1353_v62 = vpop.permute.xlu0 %1352 }
 0x489   : >> { %v1363_v63 = vsel %vm1143_vm11, %v1353_v62, 0 }
 0x48d   : >> { %v1460_v0 = vpop.permute.xlu1 %1459 }
 0x48e   : >> { %v1471_v1 = vsel %vm1143_vm11, %v1460_v0, 0 }
 0x48f   : >> { %1479 = vmatpush.bf16.xpose.msrb.mxu0 %v1471_v1  ;;  %1375 = vmatpush.bf16.xpose.msrb.mxu1 %v1363_v63 }
 0x490   : >> { %v1454_v6 = vpop.permute.xlu0 %1453 }
 0x491   : >> { %2499 = vmatmul.msk.bf16.gmra.mxu1 %vm1174_vm12, %v1209_v2 }
 0x495   : >> { %v1246_v3 = vpop.permute.xlu1 %1245 }
 0x496   : >> { %2501 = vmatmul.msk.bf16.gmra.mxu2 %vm1143_vm11, %v1246_v3 }
 0x49d   : >> { %v1458_v23 = vpop.permute.xlu1 %1457 }
 0x49e   : >> { %v1468_v5 = vsel %vm1143_vm11, %v1458_v23, 0 }
 0x49f   : >> { %1480 = vmatpush.bf16.xpose.msrb.mxu0 %v1468_v5 }
 0x4a5   : >> { %v1349_v7 = vpop.permute.xlu1 %1348 }
 0x4a6   : >> { %2508 = vmatmul.msk.bf16.vlgmr.msrb.gmra.mxu0 %vm1143_vm11, %v1454_v6  ;;  %2504 = vmatmul.msk.bf16.vlgmr.msrb.gmra.mxu1 %vm1143_vm11, %v1349_v7 }
 0x4ad   : >> { %v1351_v9 = vpop.permute.xlu1 %1350 }
 0x4b6   : >> { %2509 = vmatmul.msk.bf16.gmra.mxu0 %vm1143_vm11, %v1456_v8  ;;  %2505 = vmatmul.msk.bf16.gmra.mxu1 %vm1143_vm11, %v1351_v9 }
 0x4bb   : >> { %v1283_v21 = vpop.xlane.xlu0 %1282 }
 0x4bc   : >> { %v1290_v27 = vsub.f32 %v3282_v34, %v1283_v21 }
 0x4be   : >> { %v1293_v30 = vmul.f32 1.442695, %v1290_v27 }
 0x4d8   : >> { %v1286_v24 = vpop.xlane.xlu1 %1285 }
 0x4d9   : >> { %v1291_v19 = vsub.f32 %v1275_v38, %v1286_v24 }
 0x4db   : >> { %v1295_v14 = vmul.f32 1.442695, %v1291_v19 }
 0x4dd   : >> { %2704 = vpow2.f32 %v1295_v14 }
 0x4de   : >> { %2706 = vpow2.f32 %v1293_v30 }
 0x4e3   : >> { %v3310_v31 = vpop.eup %2704 }
 0x4e4   : >> { %v1302_v37 = vsel %vm1174_vm12, %v3310_v31, 0.0  ;;  %v2707_v39 = vpop.eup %2706 }
 0x4e5   : >> { %v1299_v48 = vsel %vm1174_vm12, %v2707_v39, 0.0 }
 0x4fe   : >> { %v3299_v12 = vpop.f32.mrf.mxu1 }
 0x506   : >> { %v3301_v13 = vpop.f32.mrf.mxu1 }
 0x50e   : >> { %v3303_v15 = vpop.f32.mrf.mxu1 }
 0x516   : >> { %v1241_v25 = vpop.f32.mrf.mxu1 }
 0x519   : >> { %v1277_v16 = vpop.f32.mrf.mxu2 }
 0x51a   : >> { %v1278_v17 = vadd.f32 %v1277_v16, %v3216_v22 }
 0x51c   : >> { %v1287_v18 = vsel %vm1174_vm12, %v1278_v17, -inf }
 0x51d   : >> { %1288 = vmax.xlane.f32.xlu2 %v1287_v18 }
 0x521   : >> { %v1279_v20 = vpop.f32.mrf.mxu2 }
 0x523   : >> { %v1482_v29 = vpop.f32.mrf.mxu0  ;;  %v1377_v35 = vpop.f32.mrf.mxu1 }
 0x524   : >> { %v1483_v26 = vadd.f32 %v1482_v29, %v3216_v22  ;;  %v3317_v34 = vadd.f32 %v1377_v35, %v3216_v22 }
 0x526   : >> { %v1491_v28 = vsel %vm1174_vm12, %v1483_v26, -inf  ;;  %v1386_v41 = vsel %vm1174_vm12, %v3317_v34, -inf }
 0x527   : >> { %1492 = vmax.xlane.f32.xlu0 %v1491_v28 }
 0x52b   : >> { %v1484_v32 = vpop.f32.mrf.mxu0  ;;  %v1379_v46 = vpop.f32.mrf.mxu1 }
 0x52c   : >> { %v1485_v33 = vadd.f32 %v1484_v32, %v3216_v22  ;;  %v3325_v10 = vadd.f32 %v1379_v46, %v3216_v22 }
 0x52e   : >> { %v1494_v36 = vsel %vm1174_vm12, %v1485_v33, -inf  ;;  %v1389_v55 = vsel %vm1174_vm12, %v3325_v10, -inf }
 0x52f   : >> { %1495 = vmax.xlane.f32.xlu1 %v1494_v36  ;;  %1303 = vadd.xlane.f32.xlu0 %v1302_v37 }
 0x533   : >> { %v1487_v38 = vpop.f32.mrf.mxu0  ;;  %v1382_v9 = vpop.f32.mrf.mxu1 }
 0x534   : >> { %v1488_v40 = vadd.f32 %v1487_v38, %v3216_v22  ;;  %v1383_v38 = vadd.f32 %v1382_v9, %v3216_v22 }
 0x536   : >> { %v1497_v42 = vsel %vm1174_vm12, %v1488_v40, -inf }
 0x537   : >> { %1498 = vmax.xlane.f32.xlu2 %v1497_v42  ;;  %1387 = vmax.xlane.f32.xlu0 %v1386_v41  ;;  %v1392_v41 = vsel %vm1174_vm12, %v1383_v38, -inf }
 0x538   : >> { %1300 = vadd.xlane.f32.xlu1 %v1299_v48 }
 0x53b   : >> { %v1489_v49 = vpop.f32.mrf.mxu0  ;;  %v1384_v19 = vpop.f32.mrf.mxu1 }
 0x540   : >> { %1390 = vmax.xlane.f32.xlu1 %v1389_v55 }
 0x54f   : >> { %1318 = vrot.lane.b32.xlu2 %v3240_v53, %s2851_s5 }
 0x559   : >> { %1316 = vrot.lane.b32.xlu1 %v3243_v54, %s2851_s5 }
 0x590   : >> { %v1289_v59 = vpop.xlane.xlu2 %1288 }
 0x591   : >> { %v1292_v11 = vsub.f32 %v1278_v17, %v1289_v59 }
 0x593   : >> { %v1297_v60 = vmul.f32 1.442695, %v1292_v11 }
 0x595   : >> { %2708 = vpow2.f32 %v1297_v60 }
 0x59a   : >> { %v1493_v61 = vpop.xlane.xlu0 %1492 }
 0x59b   : >> { %v3331_v62 = vpop.eup %2708  ;;  %v1500_v63 = vsub.f32 %v1483_v26, %v1493_v61 }
 0x59c   : >> { %v1305_v0 = vsel %vm1174_vm12, %v3331_v62, 0.0 }
 0x59d   : >> { %v1503_v1 = vmul.f32 1.442695, %v1500_v63  ;;  %1306 = vadd.xlane.f32.xlu0 %v1305_v0 }
 0x59f   : >> { %2710 = vpow2.f32 %v1503_v1 }
 0x5a2   : >> { %v1496_v2 = vpop.xlane.xlu1 %1495  ;;  %v1304_v29 = vpop.xlane.xlu0 %1303 }
 0x5a3   : >> { %v1501_v3 = vsub.f32 %v1485_v33, %v1496_v2 }
 0x5a5   : >> { %v3335_v23 = vpop.eup %2710  ;;  %v1505_v5 = vmul.f32 1.442695, %v1501_v3 }
 0x5a6   : >> { %v1509_v6 = vsel %vm1174_vm12, %v3335_v23, 0.0 }
 0x5a7   : >> { %2712 = vpow2.f32 %v1505_v5  ;;  %1510 = vadd.xlane.f32.xlu2 %v1509_v6 }
 0x5aa   : >> { %v1499_v7 = vpop.xlane.xlu2 %1498  ;;  %v1388_v36 = vpop.xlane.xlu0 %1387 }
 0x5ab   : >> { %v1502_v8 = vsub.f32 %v1488_v40, %v1499_v7  ;;  %v1301_v21 = vpop.xlane.xlu1 %1300  ;;  %v1395_v37 = vsub.f32 %v3317_v34, %v1388_v36 }
 0x5ad   : >> { %v3339_v25 = vpop.eup %2712  ;;  %v1507_v16 = vmul.f32 1.442695, %v1502_v8 }
 0x5ae   : >> { %v1512_v24 = vsel %vm1174_vm12, %v3339_v25, 0.0 }
 0x5af   : >> { %2714 = vpow2.f32 %v1507_v16  ;;  %1513 = vadd.xlane.f32.xlu1 %v1512_v24 }
 0x5b0   : >> { %2716 = vrcp.f32 %v1301_v21 }
 0x5b1   : >> { %1423 = vrot.lane.b32.xlu0 %v3240_v53, %s2852_s18  ;;  %2718 = vrcp.f32 %v1304_v29 }
 0x5b2   : >> { %v1319_v17 = vpop.permute.xlu2 %1318 }
 0x5b3   : >> { %v1328_v18 = vsel %vm1221_vm13, %v1319_v17, 0  ;;  %v1391_v26 = vpop.xlane.xlu1 %1390 }
 0x5b4   : >> { %1336 = vmatpush.bf16.msra.mxu3 %v1328_v18  ;;  %v1396_v40 = vsub.f32 %v3325_v10, %v1391_v26 }
 0x5b5   : >> { %v3346_v14 = vpop.eup %2714 }
 0x5b6   : >> { %v1515_v20 = vsel %vm1174_vm12, %v3346_v14, 0.0  ;;  %v2717_v27 = vpop.eup %2716 }
 0x5b7   : >> { %1516 = vadd.xlane.f32.xlu1 %v1515_v20  ;;  %v2719_v28 = vpop.eup %2718  ;;  %v1311_v30 = vmul.f32 %v2717_v27, %v2707_v39  ;;  %v1400_v39 = vmul.f32 1.442695, %v1396_v40 }
 0x5b8   : >> { %v1312_v33 = vmul.f32 %v2719_v28, %v3310_v31 }
 0x5b9   : >> { %1528 = vrot.lane.b32.xlu0 %v3240_v53, %s2853_s1  ;;  %v1398_v53 = vmul.f32 1.442695, %v1395_v37 }
 0x5ba   : >> { %v1314_v35 = vpack.c.bf16 %v1312_v33, %v1311_v30 }
 0x5bb   : >> { %2720 = vpow2.f32 %v1398_v53 }
 0x5bc   : >> { %2722 = vpow2.f32 %v1400_v39 }
 0x5bf   : >> { %1526 = vrot.lane.b32.xlu2 %v3243_v54, %s2853_s1 }
 0x5c1   : >> { %v2721_v42 = vpop.eup %2720 }
 0x5c2   : >> { %v1404_v31 = vsel %vm1174_vm12, %v2721_v42, 0.0  ;;  %v2723_v46 = vpop.eup %2722 }
 0x5c3   : >> { %v1407_v48 = vsel %vm1174_vm12, %v2723_v46, 0.0 }
 0x5cb   : >> { %v1317_v32 = vpop.permute.xlu1 %1316 }
 0x5cc   : >> { %1337 = vmatpush.bf16.msra.mxu3 %v1317_v32 }
 0x5cf   : >> { %2502 = vmatmul.msk.bf16.vlgmr.msra.gmra.mxu3 %vm1174_vm12, %v1314_v35 }
 0x5e3   : >> { %1393 = vmax.xlane.f32.xlu0 %v1392_v41 }
 0x5eb   : >> { %1405 = vadd.xlane.f32.xlu0 %v1404_v31 }
 0x5f3   : >> { %1408 = vadd.xlane.f32.xlu0 %v1407_v48 }
 0x607   : >> { %1421 = vrot.lane.b32.xlu0 %v3243_v54, %s2852_s18 }
 0x610   : >> { %v1307_v34 = vpop.xlane.xlu0 %1306 }
 0x611   : >> { %2724 = vrcp.f32 %v1307_v34 }
 0x617   : >> { %v2725_v49 = vpop.eup %2724 }
 0x618   : >> { %v1313_v10 = vmul.f32 %v2725_v49, %v3331_v62 }
 0x61a   : >> { %v1315_v55 = vpack.c.bf16 %v1313_v10, %v1313_v10  ;;  %v1511_v60 = vpop.xlane.xlu2 %1510 }
 0x61c   : >> { %2503 = vmatmul.msk.bf16.gmra.mxu3 %vm1174_vm12, %v1315_v55 }
 0x622   : >> { %v1514_v59 = vpop.xlane.xlu1 %1513  ;;  %v1527_v62 = vpop.permute.xlu2 %1526 }
 0x623   : >> { %v1424_v11 = vpop.permute.xlu0 %1423  ;;  %2726 = vrcp.f32 %v1514_v59 }
 0x624   : >> { %v1433_v61 = vsel %vm1221_vm13, %v1424_v11, 0  ;;  %2728 = vrcp.f32 %v1511_v60 }
 0x625   : >> { %1441 = vmatpush.bf16.msrb.mxu3 %v1433_v61 }
 0x629   : >> { %v2727_v63 = vpop.eup %2726 }
 0x62a   : >> { %v2729_v1 = vpop.eup %2728  ;;  %v1522_v2 = vmul.f32 %v2727_v63, %v3339_v25  ;;  %v1517_v5 = vpop.xlane.xlu1 %1516 }
 0x62b   : >> { %v1529_v0 = vpop.permute.xlu0 %1528  ;;  %v1521_v3 = vmul.f32 %v2729_v1, %v3335_v23  ;;  %2730 = vrcp.f32 %v1517_v5 }
 0x62c   : >> { %v1538_v54 = vsel %vm1221_vm13, %v1529_v0, 0 }
 0x62d   : >> { %1546 = vmatpush.bf16.msrb.mxu2 %v1538_v54  ;;  %v1524_v6 = vpack.c.bf16 %v1522_v2, %v1521_v3 }
 0x631   : >> { %1547 = vmatpush.bf16.msrb.mxu2 %v1527_v62  ;;  %v2731_v7 = vpop.eup %2730 }
 0x632   : >> { %v1523_v8 = vmul.f32 %v2731_v7, %v3346_v14 }
 0x634   : >> { %2510 = vmatmul.msk.bf16.vlgmr.msrb.gmra.mxu2 %vm1174_vm12, %v1524_v6  ;;  %v1525_v9 = vpack.c.bf16 %v1523_v8, %v1523_v8 }
 0x644   : >> { %2511 = vmatmul.msk.bf16.gmra.mxu2 %vm1174_vm12, %v1525_v9 }
 0x652   : >> { %v1339_v16 = vpop.f32.mrf.mxu3 }
 0x656   : >> { %v1394_v24 = vpop.xlane.xlu0 %1393 }
 0x657   : >> { %v1397_v17 = vsub.f32 %v1383_v38, %v1394_v24 }
 0x659   : >> { %v1402_v18 = vmul.f32 1.442695, %v1397_v17 }
 0x65a   : >> { %v1341_v25 = vpop.f32.mrf.mxu3 }
 0x65b   : >> { %2732 = vpow2.f32 %v1402_v18  ;;  %v2677_v19 = vpack.i.bf16 %v1341_v25, %v1339_v16 }
 0x65d   : >> { %2678 = vrot.lane.b32.xlu1 %v2677_v19, %s2854_s23  ;;  %v2585_v19 = vld [vmem:[%s3736_s20 + $0x8] sm:$0xff] (%p1119_p6) }
 0x65e   : >> { %v1406_v20 = vpop.xlane.xlu0 %1405  ;;  %1668 = vmatpush.bf16.msra.mxu0 (%p1119_p6), %v2585_v19  ;;  %v2587_v19 = vld [vmem:[%s3012_s7 + $0x8] sm:$0xff] (%p1119_p6) }
 0x65f   : > { %1880 = vmatpush.bf16.msra.mxu1 (%p1119_p6), %v2587_v19 }
 0x661   : >> { %v2733_v23 = vpop.eup %2732 }
 0x662   : >> { %v1410_v21 = vsel %vm1174_vm12, %v2733_v23, 0.0 }
 0x663   : >> { %1411 = vadd.xlane.f32.xlu0 %v1410_v21 }
 0x666   : >> { %v1409_v29 = vpop.xlane.xlu0 %1408 }
 0x667   : >> { %2734 = vrcp.f32 %v1409_v29  ;;  %v1624_v29 = vperm.slane (%p1119_p6), %v3170_v45, 0 }
 0x668   : >> { %2736 = vrcp.f32 %v1406_v20 }
 0x66d   : >> { %v2735_v14 = vpop.eup %2734 }
 0x66e   : >> { %v2737_v26 = vpop.eup %2736  ;;  %v1417_v27 = vmul.f32 %v2735_v14, %v2723_v46 }
 0x66f   : >> { %v1416_v28 = vmul.f32 %v2737_v26, %v2721_v42 }
 0x671   : >> { %v1419_v32 = vpack.c.bf16 %v1417_v27, %v1416_v28 }
 0x679   : >> { %v1422_v30 = vpop.permute.xlu0 %1421 }
 0x67a   : >> { %1442 = vmatpush.bf16.msrb.mxu3 %v1422_v30 }
 0x67d   : >> { %2506 = vmatmul.msk.bf16.vlgmr.msrb.gmra.mxu3 %vm1174_vm12, %v1419_v32 }
 0x69f   : >> { %v1344_v33 = vpop.f32.mrf.mxu3 }
 0x6a0   : >> { %1565 = vrot.lane.b32.xlu2 %v1344_v33, %s2854_s23 }
 0x6a7   : >> { %v1346_v35 = vpop.f32.mrf.mxu3 }
 0x6b7   : >> { %v1549_v36 = vpop.f32.mrf.mxu2 }
 0x6bf   : >> { %v1551_v37 = vpop.f32.mrf.mxu2 }
 0x6c0   : >> { %v2687_v53 = vpack.i.bf16 %v1551_v37, %v1549_v36 }
 0x6c7   : >> { %v1554_v38 = vpop.f32.mrf.mxu2 }
 0x6c8   : >> { %1589 = vrot.lane.b32.xlu0 %v1554_v38, %s2855_s6 }
 0x6cf   : >> { %v1556_v40 = vpop.f32.mrf.mxu2  ;;  %v2679_v59 = vpop.permute.xlu1 %2678 }
 0x6d0   : >> { %v2681_v11 = vunpack.i.h.bf16 %v2679_v59  ;;  %v2680_v60 = vunpack.i.l.bf16 %v2679_v59 }
 0x6d2   : >> { %v1595_v1 = vsel %vm1143_vm11, %v3301_v13, %v2681_v11  ;;  %v1594_v2 = vsel %vm1143_vm11, %v3299_v12, %v2680_v60 }
 0x6d6   : >> { %v1412_v41 = vpop.xlane.xlu0 %1411 }
 0x6d7   : >> { %2738 = vrcp.f32 %v1412_v41 }
 0x6dd   : >> { %v2739_v39 = vpop.eup %2738 }
 0x6de   : >> { %v1418_v31 = vmul.f32 %v2739_v39, %v2733_v23  ;;  %v2584_v23 = vld [vmem:[%s3736_s20] sm:$0xff] (%p1119_p6) }
 0x6df   : > { %1669 = vmatpush.bf16.msra.mxu0 (%p1119_p6), %v2584_v23 }
 0x6e0   : >> { %v1420_v42 = vpack.c.bf16 %v1418_v31, %v1418_v31 }
 0x6e2   : >> { %2507 = vmatmul.msk.bf16.gmra.mxu3 %vm1174_vm12, %v1420_v42 }
 0x6fa   : >> { %v1566_v49 = vpop.permute.xlu2 %1565 }
 0x6fb   : >> { %v1596_v12 = vsel %vm1143_vm11, %v3303_v15, %v1566_v49 }
 0x700   : >> { %v1444_v46 = vpop.f32.mrf.mxu3 }
 0x708   : >> { %v1446_v48 = vpop.f32.mrf.mxu3 }
 0x709   : >> { %v2682_v34 = vpack.i.bf16 %v1446_v48, %v1444_v46 }
 0x70b   : >> { %2683 = vrot.lane.b32.xlu2 %v2682_v34, %s2856_s27 }
 0x713   : >> { %2688 = vrot.lane.b32.xlu2 %v2687_v53, %s2855_s6 }
 0x73a   : >> { %v1590_v24 = vpop.permute.xlu0 %1589 }
 0x765   : >> { %v2684_v10 = vpop.permute.xlu2 %2683  ;;  %v1449_v55 = vpop.f32.mrf.mxu3 }
 0x766   : >> { %1577 = vrot.lane.b32.xlu1 %v1449_v55, %s2856_s27  ;;  %v2686_v61 = vunpack.i.h.bf16 %v2684_v10  ;;  %v2685_v63 = vunpack.i.l.bf16 %v2684_v10 }
 0x768   : >> { %v1598_v5 = vsel %vm1597_vm14, %v1594_v2, %v2685_v63  ;;  %v1599_v6 = vsel %vm1597_vm14, %v1595_v1, %v2686_v61 }
 0x76d   : >> { %v2689_v0 = vpop.permute.xlu2 %2688  ;;  %v1451_v54 = vpop.f32.mrf.mxu3 }
 0x76e   : >> { %v2691_v62 = vunpack.i.h.bf16 %v2689_v0  ;;  %v2690_v3 = vunpack.i.l.bf16 %v2689_v0 }
 0x770   : >> { %v1601_v7 = vsel %vm1174_vm12, %v1598_v5, %v2690_v3  ;;  %v1602_v8 = vsel %vm1174_vm12, %v1599_v6, %v2691_v62 }
 0x771   : >> { %v1604_v9 = vpack.c.bf16 %v1601_v7, %v1601_v7  ;;  %v1605_v16 = vpack.c.bf16 %v1602_v8, %v1602_v8 }
 0x773   : >> { %1610 = vst.msk [vmem:[%s1608_s21] sm:$0xf] %vm1609_vm15, %v1604_v9 }
 0x774   : >> { %1611 = vst.msk [vmem:[%s1608_s21 + $0x4] sm:$0xf] %vm1609_vm15, %v1605_v16 }
 0x7d8   : >> { %v1578_v13 = vpop.permute.xlu1 %1577 }
 0x7d9   : >> { %v1600_v17 = vsel %vm1597_vm14, %v1596_v12, %v1578_v13  ;;  %1121 = sbr.rel (!%p1119_p6) target bundleno = 619 (0x26b), region = 169 }
 0x7da   : >> { %v1603_v18 = vsel %vm1174_vm12, %v1600_v17, %v1590_v24 }
 0x7db   : >> { %v1606_v25 = vpack.c.bf16 %v1603_v18, %v1603_v18 }
 0x7dd   : >> { %1612 = vst.msk [vmem:[%s1608_s21 + $0x8] sm:$0xf] %vm1609_vm15, %v1606_v25 }
 0x7e4   : > { %v2581_v15 = vld [vmem:[#allocation4] sm:$0xff]  ;;  %v2582_v20 = vld [vmem:[#allocation4 + $0x8] sm:$0xff]  ;;  %v2583_v21 = vld [vmem:[#allocation4 + $0x10] sm:$0xff] }
 0x7e5   : > { %2533 = vmatmul.msk.bf16.vlgmr.msra.gmra.mxu0 %vm887_vm4, %v2581_v15 }
 0x7f5   : > { %2534 = vmatmul.msk.bf16.gmra.mxu0 %vm887_vm4, %v2582_v20  ;;  %v2586_v20 = vld [vmem:[%s3012_s7] sm:$0xff] }
 0x7f6   : > { %1881 = vmatpush.bf16.msra.mxu1 %v2586_v20 }
 0x805   : > { %2535 = vmatmul.msk.bf16.gmra.mxu0 %vm887_vm4, %v2583_v21 }
 0x862   : > { %v1671_v14 = vpop.f32.mrf.mxu0 }
 0x863   : > { %v1672_v26 = vadd.f32 %v1671_v14, %v1624_v29 }
 0x865   : > { %v3398_v22 = vadd.f32 %v1672_v26, %v3083_v52 }
 0x867   : > { %v1692_v27 = vsel %vm887_vm4, %v3398_v22, 0.0 }
 0x868   : > { %1693 = vadd.xlane.f32.xlu0 %v1692_v27 }
 0x86a   : > { %v1673_v28 = vpop.f32.mrf.mxu0 }
 0x86b   : > { %v1674_v30 = vadd.f32 %v1673_v28, %v1624_v29 }
 0x86d   : > { %v3403_v32 = vadd.f32 %v1674_v30, %v3095_v58 }
 0x86f   : > { %v1695_v33 = vsel %vm887_vm4, %v3403_v32, 0.0 }
 0x870   : > { %1696 = vadd.xlane.f32.xlu0 %v1695_v33 }
 0x872   : > { %v1676_v35 = vpop.f32.mrf.mxu0 }
 0x873   : > { %v1677_v45 = vadd.f32 %v1676_v35, %v1624_v29 }
 0x875   : > { %v3408_v36 = vadd.f32 %v1677_v45, %v3081_v51 }
 0x877   : > { %v1698_v52 = vsel %vm887_vm4, %v3408_v36, 0.0 }
 0x878   : > { %1699 = vadd.xlane.f32.xlu1 %v1698_v52 }
 0x87a   : > { %v1678_v37 = vpop.f32.mrf.mxu0 }
 0x87b   : > { %v1679_v53 = vadd.f32 %v1678_v37, %v1624_v29 }
 0x87d   : > { %v3413_v38 = vadd.f32 %v1679_v53, %v3093_v57 }
 0x87f   : > { %v1701_v58 = vsel %vm887_vm4, %v3413_v38, 0.0 }
 0x880   : > { %1702 = vadd.xlane.f32.xlu1 %v1701_v58 }
 0x882   : > { %v1681_v40 = vpop.f32.mrf.mxu0 }
 0x883   : > { %v1682_v41 = vadd.f32 %v1681_v40, %v1624_v29 }
 0x885   : > { %v3418_v39 = vadd.f32 %v1682_v41, %v3079_v50 }
 0x887   : > { %v1704_v51 = vsel %vm887_vm4, %v3418_v39, 0.0 }
 0x888   : > { %1705 = vadd.xlane.f32.xlu2 %v1704_v51 }
 0x88a   : > { %v1683_v31 = vpop.f32.mrf.mxu0 }
 0x88b   : > { %v1684_v42 = vadd.f32 %v1683_v31, %v1624_v29 }
 0x88d   : > { %v3423_v46 = vadd.f32 %v1684_v42, %v3091_v56 }
 0x88f   : > { %v1707_v57 = vsel %vm887_vm4, %v3423_v46, 0.0 }
 0x890   : > { %1708 = vadd.xlane.f32.xlu2 %v1707_v57 }
 0x8db   : > { %v1694_v48 = vpop.xlane.xlu0 %1693 }
 0x8dc   : > { %v1710_v34 = vmul.f32 %v1694_v48, %v3103_v4 }
 0x8de   : > { %v3429_v49 = vsub.f32 %v3398_v22, %v1710_v34 }
 0x8e0   : > { %v1722_v50 = vmul.f32 %v3429_v49, %v3429_v49 }
 0x8e2   : > { %v1728_v10 = vsel %vm887_vm4, %v1722_v50, 0.0 }
 0x8e3   : > { %1729 = vadd.xlane.f32.xlu0 %v1728_v10  ;;  %v1697_v55 = vpop.xlane.xlu0 %1696 }
 0x8e4   : > { %v1711_v56 = vmul.f32 %v1697_v55, %v3103_v4  ;;  %v3477_v55 = vperm.slane %v3156_v43, 0 }
 0x8e6   : > { %v3436_v59 = vsub.f32 %v3403_v32, %v1711_v56 }
 0x8e8   : > { %v1723_v11 = vmul.f32 %v3436_v59, %v3436_v59 }
 0x8ea   : > { %v1731_v60 = vsel %vm887_vm4, %v1723_v11, 0.0 }
 0x8eb   : > { %v1700_v61 = vpop.xlane.xlu1 %1699  ;;  %1732 = vadd.xlane.f32.xlu1 %v1731_v60 }
 0x8ec   : > { %v1712_v63 = vmul.f32 %v1700_v61, %v3103_v4 }
 0x8ee   : > { %v3443_v0 = vsub.f32 %v3408_v36, %v1712_v63 }
 0x8f0   : > { %v1724_v54 = vmul.f32 %v3443_v0, %v3443_v0 }
 0x8f2   : > { %v1734_v1 = vsel %vm887_vm4, %v1724_v54, 0.0 }
 0x8f3   : > { %1735 = vadd.xlane.f32.xlu2 %v1734_v1  ;;  %v1703_v2 = vpop.xlane.xlu1 %1702  ;;  %v3482_v1 = vperm.slane %v3163_v44, 0 }
 0x8f4   : > { %v1713_v62 = vmul.f32 %v1703_v2, %v3103_v4 }
 0x8f6   : > { %v3450_v3 = vsub.f32 %v3413_v38, %v1713_v62 }
 0x8f8   : > { %v1725_v5 = vmul.f32 %v3450_v3, %v3450_v3 }
 0x8fa   : > { %v1737_v6 = vsel %vm887_vm4, %v1725_v5, 0.0 }
 0x8fb   : > { %v1706_v7 = vpop.xlane.xlu2 %1705  ;;  %1738 = vadd.xlane.f32.xlu0 %v1737_v6 }
 0x8fc   : > { %v1714_v8 = vmul.f32 %v1706_v7, %v3103_v4 }
 0x8fe   : > { %v3457_v9 = vsub.f32 %v3418_v39, %v1714_v8 }
 0x900   : > { %v1726_v16 = vmul.f32 %v3457_v9, %v3457_v9 }
 0x902   : > { %v1740_v12 = vsel %vm887_vm4, %v1726_v16, 0.0 }
 0x903   : > { %v1709_v13 = vpop.xlane.xlu2 %1708  ;;  %1741 = vadd.xlane.f32.xlu1 %v1740_v12 }
 0x904   : > { %v1715_v24 = vmul.f32 %v1709_v13, %v3103_v4 }
 0x906   : > { %v3464_v17 = vsub.f32 %v3423_v46, %v1715_v24 }
 0x908   : > { %v1727_v18 = vmul.f32 %v3464_v17, %v3464_v17 }
 0x90a   : > { %v1743_v25 = vsel %vm887_vm4, %v1727_v18, 0.0 }
 0x90b   : > { %1744 = vadd.xlane.f32.xlu2 %v1743_v25 }
 0x956   : > { %v1730_v23 = vpop.xlane.xlu0 %1729 }
 0x957   : > { %v1746_v15 = vmul.f32 %v1730_v23, %v3103_v4 }
 0x959   : > { %v1752_v21 = vadd.f32 1e-05, %v1746_v15 }
 0x95b   : > { %2741 = vrsqrt.f32 %v1752_v21  ;;  %vm1764_vm1 = vweird.f32 %v1752_v21 }
 0x95e   : > { %v1733_v29 = vpop.xlane.xlu1 %1732 }
 0x95f   : > { %v1747_v14 = vmul.f32 %v1733_v29, %v3103_v4 }
 0x961   : > { %v2742_v26 = vpop.eup %2741  ;;  %v1753_v27 = vadd.f32 1e-05, %v1747_v14 }
 0x962   : > { %v1759_v28 = vmul.f32 %v2742_v26, %v1752_v21  ;;  %vm1765_vm0 = vweird.f32 %v2742_v26 }
 0x963   : > { %2743 = vrsqrt.f32 %v1753_v27  ;;  %vm1766_vm2 = vmor %vm1764_vm1, %vm1765_vm0  ;;  %vm1774_vm5 = vweird.f32 %v1753_v27 }
 0x964   : > { %v1760_v30 = vmul.f32 %v2742_v26, %v1759_v28 }
 0x966   : > { %v1761_v33 = vmul.f32 0.5, %v1760_v30  ;;  %v1736_v35 = vpop.xlane.xlu2 %1735 }
 0x967   : > { %v1748_v45 = vmul.f32 %v1736_v35, %v3103_v4 }
 0x968   : > { %v1762_v52 = vsub.f32 1.5, %v1761_v33 }
 0x969   : > { %v2744_v37 = vpop.eup %2743  ;;  %v1754_v53 = vadd.f32 1e-05, %v1748_v45 }
 0x96a   : > { %v1763_v58 = vmul.f32 %v2742_v26, %v1762_v52  ;;  %v1769_v40 = vmul.f32 %v2744_v37, %v1753_v27  ;;  %vm1775_vm3 = vweird.f32 %v2744_v37 }
 0x96b   : > { %2745 = vrsqrt.f32 %v1754_v53  ;;  %vm1776_vm6 = vmor %vm1774_vm5, %vm1775_vm3  ;;  %vm1784_vm8 = vweird.f32 %v1754_v53 }
 0x96c   : > { %v1770_v41 = vmul.f32 %v2744_v37, %v1769_v40  ;;  %v1767_v42 = vsel %vm1766_vm2, %v2742_v26, %v1763_v58 }
 0x96d   : > { %v1818_v10 = vmul.f32 %v1767_v42, %v3429_v49 }
 0x96e   : > { %v1771_v51 = vmul.f32 0.5, %v1770_v41  ;;  %v1739_v31 = vpop.xlane.xlu0 %1738 }
 0x96f   : > { %v1749_v57 = vmul.f32 %v1739_v31, %v3103_v4  ;;  %v1827_v54 = vmul.f32 %v3477_v55, %v1818_v10 }
 0x970   : > { %v1772_v48 = vsub.f32 1.5, %v1771_v51 }
 0x971   : > { %v2746_v34 = vpop.eup %2745  ;;  %v1755_v50 = vadd.f32 1e-05, %v1749_v57  ;;  %v1836_v8 = vadd.f32 %v3482_v1, %v1827_v54 }
 0x972   : > { %v1773_v56 = vmul.f32 %v2744_v37, %v1772_v48  ;;  %v1779_v11 = vmul.f32 %v2746_v34, %v1754_v53  ;;  %vm1785_vm7 = vweird.f32 %v2746_v34 }
 0x973   : > { %2747 = vrsqrt.f32 %v1755_v50  ;;  %vm1786_vm9 = vmor %vm1784_vm8, %vm1785_vm7  ;;  %vm1794_vm11 = vweird.f32 %v1755_v50 }
 0x974   : > { %v1780_v60 = vmul.f32 %v2746_v34, %v1779_v11  ;;  %v1777_v61 = vsel %vm1776_vm6, %v2744_v37, %v1773_v56 }
 0x975   : > { %v1819_v63 = vmul.f32 %v1777_v61, %v3436_v59 }
 0x976   : > { %v1781_v2 = vmul.f32 0.5, %v1780_v60  ;;  %v1742_v62 = vpop.xlane.xlu1 %1741 }
 0x977   : > { %v1750_v49 = vmul.f32 %v1742_v62, %v3103_v4  ;;  %v1828_v43 = vmul.f32 %v3477_v55, %v1819_v63 }
 0x978   : > { %v1782_v5 = vsub.f32 1.5, %v1781_v2 }
 0x979   : > { %v2748_v6 = vpop.eup %2747  ;;  %v1756_v7 = vadd.f32 1e-05, %v1750_v49  ;;  %v1837_v16 = vadd.f32 %v3482_v1, %v1828_v43 }
 0x97a   : > { %v1783_v12 = vmul.f32 %v2746_v34, %v1782_v5  ;;  %v1789_v59 = vmul.f32 %v2748_v6, %v1755_v50  ;;  %vm1795_vm10 = vweird.f32 %v2748_v6 }
 0x97b   : > { %2749 = vrsqrt.f32 %v1756_v7  ;;  %v1842_v13 = vpack.c.bf16 %v1837_v16, %v1836_v8  ;;  %vm1796_vm12 = vmor %vm1794_vm11, %vm1795_vm10  ;;  %vm1804_vm14 = vweird.f32 %v1756_v7 }
 0x97c   : > { %v1790_v44 = vmul.f32 %v2748_v6, %v1789_v59  ;;  %v1787_v25 = vsel %vm1786_vm9, %v2746_v34, %v1783_v12 }
 0x97d   : > { %2544 = vmatmul.msk.bf16.vlgmr.msra.gmra.mxu1 %vm887_vm4, %v1842_v13  ;;  %v1820_v21 = vmul.f32 %v1787_v25, %v3443_v0 }
 0x97e   : > { %v1791_v24 = vmul.f32 0.5, %v1790_v44  ;;  %v1745_v18 = vpop.xlane.xlu2 %1744 }
 0x97f   : > { %v1751_v19 = vmul.f32 %v1745_v18, %v3103_v4  ;;  %v1829_v30 = vmul.f32 %v3477_v55, %v1820_v21 }
 0x980   : > { %v1792_v23 = vsub.f32 1.5, %v1791_v24 }
 0x981   : > { %v2750_v15 = vpop.eup %2749  ;;  %v1757_v20 = vadd.f32 1e-05, %v1751_v19  ;;  %v1838_v52 = vadd.f32 %v3482_v1, %v1829_v30  ;;  %v2591_v30 = vld [vmem:[%s3022_s19 + $0x18] sm:$0xff] }
 0x982   : > { %v1793_v29 = vmul.f32 %v2748_v6, %v1792_v23  ;;  %v1799_v14 = vmul.f32 %v2750_v15, %v1756_v7  ;;  %vm1805_vm13 = vweird.f32 %v2750_v15  ;;  %2187 = vmatpush.bf16.msra.mxu2 %v2591_v30  ;;  %2599 = vmatpush.bf16.msra.mxu3 %v2591_v30 }
 0x983   : > { %2751 = vrsqrt.f32 %v1757_v20  ;;  %vm1806_vm15 = vmor %vm1804_vm14, %vm1805_vm13  ;;  %vm1814_vm1 = vweird.f32 %v1757_v20 }
 0x984   : > { %v1797_v26 = vsel %vm1796_vm12, %v2748_v6, %v1793_v29  ;;  %v1800_v27 = vmul.f32 %v2750_v15, %v1799_v14 }
 0x985   : > { %v1821_v28 = vmul.f32 %v1797_v26, %v3450_v3 }
 0x986   : > { %v1801_v33 = vmul.f32 0.5, %v1800_v27 }
 0x987   : > { %v1830_v4 = vmul.f32 %v3477_v55, %v1821_v28 }
 0x988   : > { %v1802_v35 = vsub.f32 1.5, %v1801_v33 }
 0x989   : > { %v2752_v45 = vpop.eup %2751  ;;  %v1839_v0 = vadd.f32 %v3482_v1, %v1830_v4 }
 0x98a   : > { %v1803_v37 = vmul.f32 %v2750_v15, %v1802_v35  ;;  %v1809_v53 = vmul.f32 %v2752_v45, %v1757_v20  ;;  %vm1815_vm0 = vweird.f32 %v2752_v45 }
 0x98b   : > { %v1843_v58 = vpack.c.bf16 %v1839_v0, %v1838_v52  ;;  %vm1816_vm2 = vmor %vm1814_vm1, %vm1815_vm0 }
 0x98c   : > { %v1810_v40 = vmul.f32 %v2752_v45, %v1809_v53  ;;  %v1807_v3 = vsel %vm1806_vm15, %v2750_v15, %v1803_v37 }
 0x98d   : > { %2545 = vmatmul.msk.bf16.gmra.mxu1 %vm887_vm4, %v1843_v58  ;;  %v1822_v31 = vmul.f32 %v1807_v3, %v3457_v9  ;;  %v3509_v9 = vld [vmem:[%s3737_s22] ss:$0 sm:$0xff] }
 0x98e   : > { %v1811_v41 = vmul.f32 0.5, %v1810_v40  ;;  %v2590_v40 = vld [vmem:[%s3022_s19 + $0x10] sm:$0xff] }
 0x98f   : > { %v1831_v34 = vmul.f32 %v3477_v55, %v1822_v31  ;;  %2188 = vmatpush.bf16.msra.mxu2 %v2590_v40  ;;  %2600 = vmatpush.bf16.msra.mxu3 %v2590_v40 }
 0x990   : > { %v1812_v51 = vsub.f32 1.5, %v1811_v41 }
 0x991   : > { %v1840_v10 = vadd.f32 %v3482_v1, %v1831_v34 }
 0x992   : > { %v1813_v42 = vmul.f32 %v2752_v45, %v1812_v51 }
 0x994   : > { %v1817_v57 = vsel %vm1816_vm2, %v2752_v45, %v1813_v42 }
 0x995   : > { %v1823_v48 = vmul.f32 %v1817_v57, %v3464_v17 }
 0x997   : > { %v1832_v50 = vmul.f32 %v3477_v55, %v1823_v48 }
 0x999   : > { %v1841_v56 = vadd.f32 %v3482_v1, %v1832_v50 }
 0x99b   : > { %v1844_v11 = vpack.c.bf16 %v1841_v56, %v1840_v10 }
 0x99d   : > { %2546 = vmatmul.msk.bf16.gmra.mxu1 %vm887_vm4, %v1844_v11 }
 0x9fa   : > { %v1883_v60 = vpop.f32.mrf.mxu1 }
 0x9fb   : > { %v3512_v17 = vadd.f32 %v3509_v9, %v1883_v60 }
 0x9fd   : > { %v3515_v61 = vmul.f32 0.70710677, %v3512_v17  ;;  %v3594_v40 = vmul.f32 0.5, %v3512_v17 }
 0x9ff   : > { %v1922_v55 = vand.u32 2147483647, %v3515_v61  ;;  %vm1910_vm0 = vcmp.lt.f32.partialorder %v3515_v61, 0.0 }
 0xa01   : > { %v1928_v63 = vmul.f32 0.3275911, %v1922_v55  ;;  %v2084_v26 = vsub.f32 0.0, %v1922_v55 }
 0xa02   : > { %v1885_v54 = vpop.f32.mrf.mxu1 }
 0xa03   : > { %v1934_v1 = vadd.f32 1.0, %v1928_v63  ;;  %v3519_v2 = vadd.f32 %v3509_v9, %v1885_v54  ;;  %v2090_v52 = vmul.f32 %v2084_v26, %v1922_v55  ;;  %v2589_v55 = vld [vmem:[%s3022_s19 + $0x8] sm:$0xff] }
 0xa04   : > { %2189 = vmatpush.bf16.msra.mxu2 %v2589_v55  ;;  %2601 = vmatpush.bf16.msra.mxu3 %v2589_v55 }
 0xa05   : > { %2753 = vrcp.f32 %v1934_v1  ;;  %v3522_v62 = vmul.f32 0.70710677, %v3519_v2  ;;  %v1951_v13 = vand.u32 2147483648, %v1934_v1  ;;  %v1949_v18 = vand.u32 2147483647, %v1934_v1 }
 0xa06   : > { %vm1945_vm5 = vweird.f32 %v1934_v1  ;;  %v2096_v34 = vmul.f32 1.442695, %v2090_v52 }
 0xa07   : > { %v3525_v49 = vand.u32 2147483647, %v3522_v62  ;;  %v1952_v15 = vor.u32 1.1754944e-38, %v1951_v13  ;;  %vm1950_vm7 = vcmp.eq.f32.partialorder %v1949_v18, 8.507059e+37  ;;  %vm1911_vm2 = vcmp.lt.f32.partialorder %v3522_v62, 0.0 }
 0xa09   : > { %v1929_v43 = vmul.f32 0.3275911, %v3525_v49  ;;  %v2085_v11 = vsub.f32 0.0, %v3525_v49 }
 0xa0a   : > { %v1888_v5 = vpop.f32.mrf.mxu1 }
 0xa0b   : > { %v2754_v6 = vpop.eup %2753  ;;  %v3529_v7 = vadd.f32 %v3509_v9, %v1888_v5  ;;  %v1935_v16 = vadd.f32 1.0, %v1929_v43 }
 0xa0c   : > { %v1941_v8 = vmul.f32 %v2754_v6, %v1934_v1  ;;  %vm1946_vm3 = vweird.f32 %v2754_v6 }
 0xa0d   : > { %v3532_v12 = vmul.f32 0.70710677, %v3529_v7  ;;  %2755 = vrcp.f32 %v1935_v16  ;;  %vm1947_vm6 = vmor %vm1945_vm5, %vm1946_vm3  ;;  %v1966_v0 = vand.u32 2147483648, %v1935_v16  ;;  %v1964_v53 = vand.u32 2147483647, %v1935_v16 }
 0xa0e   : > { %v1942_v59 = vsub.f32 1.0, %v1941_v8  ;;  %vm1960_vm9 = vweird.f32 %v1935_v16 }
 0xa0f   : > { %v3535_v44 = vand.u32 2147483647, %v3532_v12  ;;  %v1967_v50 = vor.u32 1.1754944e-38, %v1966_v0  ;;  %vm1965_vm11 = vcmp.eq.f32.partialorder %v1964_v53, 8.507059e+37 }
 0xa10   : > { %v1943_v24 = vmul.f32 %v2754_v6, %v1942_v59 }
 0xa11   : > { %v1930_v25 = vmul.f32 0.3275911, %v3535_v44 }
 0xa12   : > { %v1944_v19 = vadd.f32 %v2754_v6, %v1943_v24  ;;  %v1890_v23 = vpop.f32.mrf.mxu1  ;;  %v2091_v24 = vmul.f32 %v2085_v11, %v3525_v49  ;;  %v2086_v49 = vsub.f32 0.0, %v3535_v44 }
 0xa13   : > { %v3538_v20 = vadd.f32 1.0, %v1930_v25  ;;  %v3541_v21 = vadd.f32 %v3509_v9, %v1890_v23  ;;  %v2756_v29 = vpop.eup %2755  ;;  %v2588_v23 = vld [vmem:[%s3022_s19] sm:$0xff] }
 0xa14   : > { %v1948_v14 = vsel %vm1947_vm6, %v2754_v6, %v1944_v19  ;;  %v1956_v28 = vmul.f32 %v2756_v29, %v1935_v16  ;;  %vm1961_vm8 = vweird.f32 %v2756_v29  ;;  %2190 = vmatpush.bf16.msra.mxu2 %v2588_v23  ;;  %2602 = vmatpush.bf16.msra.mxu3 %v2588_v23 }
 0xa15   : > { %v3543_v27 = vsel %vm1950_vm7, %v1952_v15, %v1948_v14  ;;  %2757 = vrcp.f32 %v3538_v20  ;;  %v3549_v35 = vmul.f32 0.70710677, %v3541_v21  ;;  %vm1962_vm10 = vmor %vm1960_vm9, %vm1961_vm8  ;;  %v1981_v6 = vand.u32 2147483648, %v3538_v20 }
 0xa16   : > { %v2030_v33 = vmul.f32 1.0614054, %v3543_v27  ;;  %v1957_v4 = vsub.f32 1.0, %v1956_v28  ;;  %v1979_v59 = vand.u32 2147483647, %v3538_v20  ;;  %vm1975_vm13 = vweird.f32 %v3538_v20 }
 0xa17   : > { %v3552_v58 = vand.u32 2147483647, %v3549_v35 }
 0xa18   : > { %v2036_v45 = vadd.f32 -1.4531521, %v2030_v33  ;;  %v1958_v37 = vmul.f32 %v2756_v29, %v1957_v4  ;;  %vm1980_vm15 = vcmp.eq.f32.partialorder %v1979_v59, 8.507059e+37 }
 0xa19   : > { %v1931_v42 = vmul.f32 0.3275911, %v3552_v58 }
 0xa1a   : > { %v2042_v3 = vmul.f32 %v2036_v45, %v3543_v27  ;;  %v1893_v41 = vpop.f32.mrf.mxu1  ;;  %v1959_v31 = vadd.f32 %v2756_v29, %v1958_v37  ;;  %v2098_v45 = vmul.f32 1.442695, %v2091_v24 }
 0xa1b   : > { %v2758_v51 = vpop.eup %2757  ;;  %v3558_v57 = vadd.f32 %v3509_v9, %v1893_v41  ;;  %v3563_v60 = vadd.f32 1.0, %v1931_v42 }
 0xa1c   : > { %v2048_v48 = vadd.f32 1.4214138, %v2042_v3  ;;  %v1971_v10 = vmul.f32 %v2758_v51, %v3538_v20  ;;  %v1963_v56 = vsel %vm1962_vm10, %v2756_v29, %v1959_v31  ;;  %vm1976_vm12 = vweird.f32 %v2758_v51 }
 0xa1d   : > { %v3567_v54 = vsel %vm1965_vm11, %v1967_v50, %v1963_v56  ;;  %v3570_v43 = vmul.f32 0.70710677, %v3558_v57  ;;  %2759 = vrcp.f32 %v3563_v60  ;;  %vm1977_vm14 = vmor %vm1975_vm13, %vm1976_vm12  ;;  %v1982_v29 = vor.u32 1.1754944e-38, %v1981_v6 }
 0xa1e   : > { %v2054_v63 = vmul.f32 %v2048_v48, %v3543_v27  ;;  %v1972_v1 = vsub.f32 1.0, %v1971_v10  ;;  %v2031_v5 = vmul.f32 1.0614054, %v3567_v54  ;;  %2761 = vpow2.f32 %v2096_v34 }
 0xa1f   : > { %v3578_v18 = vand.u32 2147483647, %v3570_v43  ;;  %v1996_v17 = vand.u32 2147483648, %v3563_v60  ;;  %v1994_v56 = vand.u32 2147483647, %v3563_v60  ;;  %vm1990_vm3 = vweird.f32 %v3563_v60 }
 0xa20   : > { %v2060_v8 = vadd.f32 -0.28449672, %v2054_v63  ;;  %v1973_v16 = vmul.f32 %v2758_v51, %v1972_v1  ;;  %v2037_v13 = vadd.f32 -1.4531521, %v2031_v5  ;;  %vm2173_vm11 = vcmask 523264  }
 0xa21   : > { %v1932_v14 = vmul.f32 0.3275911, %v3578_v18  ;;  %vm1995_vm6 = vcmp.eq.f32.partialorder %v1994_v56, 8.507059e+37  ;;  %v1899_v56 = vmul.f32 0.5, %v3519_v2  ;;  %vm1912_vm12 = vcmp.lt.f32.partialorder %v3532_v12, 0.0 }
 0xa22   : > { %v2066_v25 = vmul.f32 %v2060_v8, %v3543_v27  ;;  %v1974_v19 = vadd.f32 %v2758_v51, %v1973_v16  ;;  %v2043_v15 = vmul.f32 %v2037_v13, %v3567_v54  ;;  %v1895_v30 = vpop.f32.mrf.mxu1  ;;  %v1997_v16 = vor.u32 1.1754944e-38, %v1996_v17 }
 0xa23   : > { %v2760_v33 = vpop.eup %2759  ;;  %v3588_v20 = vadd.f32 1.0, %v1932_v14  ;;  %v3599_v41 = vadd.f32 %v3509_v9, %v1895_v30  ;;  %v2857_v9 = vmov 1.0   ;;  %v2088_v2 = vsub.f32 0.0, %v3578_v18 }
 0xa24   : > { %v2072_v26 = vadd.f32 0.2548296, %v2066_v25  ;;  %v1978_v28 = vsel %vm1977_vm14, %v2758_v51, %v1974_v19  ;;  %v2049_v4 = vadd.f32 1.4214138, %v2043_v15  ;;  %v1986_v53 = vmul.f32 %v2760_v33, %v3563_v60  ;;  %v2762_v51 = vpop.eup %2761 }
 0xa25   : > { %v3586_v52 = vsel %vm1980_vm15, %v1982_v29, %v1978_v28  ;;  %2763 = vrcp.f32 %v3588_v20  ;;  %vm1991_vm1 = vweird.f32 %v2760_v33  ;;  %v1916_v11 = vsel %vm1910_vm0, -1.0, %v2857_v9 }
 0xa26   : > { %v2078_v0 = vmul.f32 %v2072_v26, %v3543_v27  ;;  %v2032_v37 = vmul.f32 1.0614054, %v3586_v52  ;;  %v2055_v3 = vmul.f32 %v2049_v4, %v3567_v54  ;;  %v2092_v27 = vmul.f32 %v2086_v49, %v3535_v44  ;;  %vm1992_vm5 = vmor %vm1990_vm3, %vm1991_vm1 }
 0xa27   : > { %v1987_v42 = vsub.f32 1.0, %v1986_v53  ;;  %2765 = vpow2.f32 %v2098_v45  ;;  %v3610_v44 = vmul.f32 0.70710677, %v3599_v41  ;;  %v2087_v60 = vsub.f32 0.0, %v3552_v58 }
 0xa28   : > { %v2038_v31 = vadd.f32 -1.4531521, %v2032_v37  ;;  %v2108_v48 = vmul.f32 %v2762_v51, %v2078_v0  ;;  %v2061_v34 = vadd.f32 -0.28449672, %v2055_v3  ;;  %v2100_v63 = vmul.f32 1.442695, %v2092_v27 }
 0xa29   : > { %v1988_v10 = vmul.f32 %v2760_v33, %v1987_v42  ;;  %v3614_v59 = vand.u32 2147483647, %v3610_v44  ;;  %v2009_v29 = vand.u32 2147483647, %v3588_v20  ;;  %v1917_v14 = vsel %vm1911_vm2, -1.0, %v2857_v9 }
 0xa2a   : > { %v2044_v50 = vmul.f32 %v2038_v31, %v3586_v52  ;;  %v2067_v61 = vmul.f32 %v2061_v34, %v3567_v54  ;;  %v2114_v6 = vsub.f32 1.0, %v2108_v48  ;;  %v2011_v4 = vand.u32 2147483648, %v3588_v20 }
 0xa2b   : > { %v1989_v1 = vadd.f32 %v2760_v33, %v1988_v10  ;;  %v2764_v5 = vpop.eup %2763  ;;  %v1933_v45 = vmul.f32 0.3275911, %v3614_v59  ;;  %2767 = vpow2.f32 %v2100_v63  ;;  %v2093_v3 = vmul.f32 %v2087_v60, %v3552_v58 }
 0xa2c   : > { %v2050_v55 = vadd.f32 1.4214138, %v2044_v50  ;;  %v2073_v8 = vadd.f32 0.2548296, %v2067_v61  ;;  %v2001_v25 = vmul.f32 %v2764_v5, %v3588_v20  ;;  %v2120_v30 = vmul.f32 %v2114_v6, %v1916_v11 }
 0xa2d   : > { %v1993_v24 = vsel %vm1992_vm5, %v2760_v33, %v1989_v1  ;;  %v2766_v19 = vpop.eup %2765  ;;  %vm2006_vm7 = vweird.f32 %v2764_v5  ;;  %v1939_v62 = vadd.f32 1.0, %v1933_v45  ;;  %vm2005_vm8 = vweird.f32 %v3588_v20 }
 0xa2e   : > { %v2056_v13 = vmul.f32 %v2050_v55, %v3586_v52  ;;  %v2079_v23 = vmul.f32 %v2073_v8, %v3567_v54  ;;  %v1998_v15 = vsel %vm1995_vm6, %v1997_v16, %v1993_v24  ;;  %v2002_v49 = vsub.f32 1.0, %v2001_v25  ;;  %vm2007_vm9 = vmor %vm2005_vm8, %vm2006_vm7 }
 0xa2f   : > { %v2033_v28 = vmul.f32 1.0614054, %v1998_v15  ;;  %v2126_v42 = vadd.f32 1.0, %v2120_v30  ;;  %v2012_v34 = vor.u32 1.1754944e-38, %v2011_v4  ;;  %2769 = vrcp.f32 %v1939_v62 }
 0xa30   : > { %v2062_v26 = vadd.f32 -0.28449672, %v2056_v13  ;;  %v2109_v33 = vmul.f32 %v2766_v19, %v2079_v23  ;;  %v2003_v37 = vmul.f32 %v2764_v5, %v2002_v49  ;;  %vm2010_vm10 = vcmp.eq.f32.partialorder %v2009_v29, 8.507059e+37 }
 0xa31   : > { %v2039_v0 = vadd.f32 -1.4531521, %v2033_v28  ;;  %v2102_v58 = vmul.f32 1.442695, %v2093_v3  ;;  %v2768_v1 = vpop.eup %2767  ;;  %v2132_v20 = vmul.f32 %v2126_v42, %v3594_v40  ;;  %v1918_v4 = vsel %vm1912_vm12, -1.0, %v2857_v9 }
 0xa32   : > { %v2068_v54 = vmul.f32 %v2062_v26, %v3586_v52  ;;  %v2115_v53 = vsub.f32 1.0, %v2109_v33  ;;  %v2004_v27 = vadd.f32 %v2764_v5, %v2003_v37  ;;  %v2026_v26 = vand.u32 2147483648, %v1939_v62 }
 0xa33   : > { %v2045_v31 = vmul.f32 %v2039_v0, %v1998_v15  ;;  %2771 = vpow2.f32 %v2102_v58  ;;  %vm1913_vm14 = vcmp.lt.f32.partialorder %v3549_v35, 0.0  ;;  %v2094_v12 = vmul.f32 %v2088_v2, %v3578_v18 }
 0xa34   : > { %v2074_v51 = vadd.f32 0.2548296, %v2068_v54  ;;  %v2121_v48 = vmul.f32 %v2115_v53, %v1917_v14  ;;  %v2008_v10 = vsel %vm2007_vm9, %v2764_v5, %v2004_v27  ;;  %v2024_v14 = vand.u32 2147483647, %v1939_v62 }
 0xa35   : > { %v2051_v50 = vadd.f32 1.4214138, %v2045_v31  ;;  %v2013_v61 = vsel %vm2010_vm10, %v2012_v34, %v2008_v10  ;;  %v2770_v24 = vpop.eup %2769  ;;  %vm2020_vm15 = vweird.f32 %v1939_v62  ;;  %v2027_v53 = vor.u32 1.1754944e-38, %v2026_v26 }
 0xa36   : > { %v2080_v17 = vmul.f32 %v2074_v51, %v3586_v52  ;;  %v2127_v11 = vadd.f32 1.0, %v2121_v48  ;;  %v2034_v63 = vmul.f32 1.0614054, %v2013_v61  ;;  %v2016_v19 = vmul.f32 %v2770_v24, %v1939_v62 }
 0xa37   : > { %v2057_v55 = vmul.f32 %v2051_v50, %v1998_v15  ;;  %vm2021_vm13 = vweird.f32 %v2770_v24  ;;  %vm2025_vm1 = vcmp.eq.f32.partialorder %v2024_v14, 8.507059e+37  ;;  %v1919_v31 = vsel %vm1913_vm14, -1.0, %v2857_v9 }
 0xa38   : > { %v2133_v6 = vmul.f32 %v2127_v11, %v1899_v56  ;;  %v2110_v8 = vmul.f32 %v2768_v1, %v2080_v17  ;;  %v2040_v13 = vadd.f32 -1.4531521, %v2034_v63  ;;  %v2017_v29 = vsub.f32 1.0, %v2016_v19  ;;  %vm2022_vm0 = vmor %vm2020_vm15, %vm2021_vm13 }
 0xa39   : > { %v2063_v16 = vadd.f32 -0.28449672, %v2057_v55  ;;  %v2772_v33 = vpop.eup %2771  ;;  %v2104_v27 = vmul.f32 1.442695, %v2094_v12  ;;  %v2089_v48 = vsub.f32 0.0, %v3614_v59  ;;  %v1900_v62 = vmul.f32 0.5, %v3529_v7 }
 0xa3a   : > { %v2138_v52 = vpack.c.bf16 %v2133_v6, %v2132_v20  ;;  %v2046_v25 = vmul.f32 %v2040_v13, %v2013_v61  ;;  %v2116_v23 = vsub.f32 1.0, %v2110_v8  ;;  %v2018_v30 = vmul.f32 %v2770_v24, %v2017_v29 }
 0xa3b   : > { %v2069_v5 = vmul.f32 %v2063_v16, %v1998_v15  ;;  %v1901_v17 = vmul.f32 0.5, %v3541_v21  ;;  %2773 = vpow2.f32 %v2104_v27  ;;  %v2095_v11 = vmul.f32 %v2089_v48, %v3614_v59 }
 0xa3c   : > { %2563 = vmatmul.msk.bf16.vlgmr.msra.gmra.mxu2 %vm2173_vm11, %v2138_v52  ;;  %v2052_v40 = vadd.f32 1.4214138, %v2046_v25  ;;  %v2122_v45 = vmul.f32 %v2116_v23, %v1918_v4  ;;  %v2019_v37 = vadd.f32 %v2770_v24, %v2018_v30  ;;  %vm1914_vm2 = vcmp.lt.f32.partialorder %v3570_v43, 0.0 }
 0xa3d   : > { %v2075_v60 = vadd.f32 0.2548296, %v2069_v5  ;;  %v2106_v8 = vmul.f32 1.442695, %v2095_v11  ;;  %v1920_v19 = vsel %vm1914_vm2, -1.0, %v2857_v9  ;;  %vm1915_vm3 = vcmp.lt.f32.partialorder %v3610_v44, 0.0 }
 0xa3e   : > { %v2058_v49 = vmul.f32 %v2052_v40, %v2013_v61  ;;  %v2128_v35 = vadd.f32 1.0, %v2122_v45  ;;  %v1902_v14 = vmul.f32 0.5, %v3558_v57  ;;  %v1903_v26 = vmul.f32 0.5, %v3599_v41 }
 0xa3f   : > { %v2081_v28 = vmul.f32 %v2075_v60, %v1998_v15  ;;  %v2023_v15 = vsel %vm2022_vm0, %v2770_v24, %v2019_v37  ;;  %2775 = vpow2.f32 %v2106_v8  ;;  %v1921_v60 = vsel %vm1915_vm3, -1.0, %v2857_v9 }
 0xa40   : > { %v2064_v0 = vadd.f32 -0.28449672, %v2058_v49  ;;  %v2028_v42 = vsel %vm2025_vm1, %v2027_v53, %v2023_v15  ;;  %v2134_v58 = vmul.f32 %v2128_v35, %v1900_v62 }
 0xa41   : > { %v2111_v54 = vmul.f32 %v2772_v33, %v2081_v28  ;;  %v2035_v18 = vmul.f32 1.0614054, %v2028_v42  ;;  %v2774_v13 = vpop.eup %2773  ;;  %v2214_v33 = vperm.slane %v3177_v47, 0 }
 0xa42   : > { %v2070_v51 = vmul.f32 %v2064_v0, %v2013_v61 }
 0xa43   : > { %v2117_v3 = vsub.f32 1.0, %v2111_v54  ;;  %v2041_v56 = vadd.f32 -1.4531521, %v2035_v18 }
 0xa44   : > { %v2076_v10 = vadd.f32 0.2548296, %v2070_v51 }
 0xa45   : > { %v2123_v34 = vmul.f32 %v2117_v3, %v1919_v31  ;;  %v2047_v63 = vmul.f32 %v2041_v56, %v2028_v42  ;;  %v2776_v25 = vpop.eup %2775 }
 0xa46   : > { %v2082_v1 = vmul.f32 %v2076_v10, %v2013_v61 }
 0xa47   : > { %v2129_v50 = vadd.f32 1.0, %v2123_v34  ;;  %v2053_v20 = vadd.f32 1.4214138, %v2047_v63 }
 0xa48   : > { %v2112_v7 = vmul.f32 %v2774_v13, %v2082_v1 }
 0xa49   : > { %v2135_v55 = vmul.f32 %v2129_v50, %v1901_v17  ;;  %v2059_v16 = vmul.f32 %v2053_v20, %v2028_v42 }
 0xa4a   : > { %v2118_v52 = vsub.f32 1.0, %v2112_v7 }
 0xa4b   : > { %v2139_v6 = vpack.c.bf16 %v2135_v55, %v2134_v58  ;;  %v2065_v24 = vadd.f32 -0.28449672, %v2059_v16 }
 0xa4c   : > { %v2124_v61 = vmul.f32 %v2118_v52, %v1920_v19 }
 0xa4d   : > { %2564 = vmatmul.msk.bf16.vlgmr.msra.gmra.mxu3 %vm2173_vm11, %v2139_v6  ;;  %v2071_v21 = vmul.f32 %v2065_v24, %v2028_v42 }
 0xa4e   : > { %v2130_v40 = vadd.f32 1.0, %v2124_v61 }
 0xa4f   : > { %v2077_v5 = vadd.f32 0.2548296, %v2071_v21 }
 0xa50   : > { %v2136_v28 = vmul.f32 %v2130_v40, %v1902_v14 }
 0xa51   : > { %v2083_v59 = vmul.f32 %v2077_v5, %v2028_v42 }
 0xa53   : > { %v2113_v2 = vmul.f32 %v2776_v25, %v2083_v59 }
 0xa55   : > { %v2119_v23 = vsub.f32 1.0, %v2113_v2 }
 0xa57   : > { %v2125_v29 = vmul.f32 %v2119_v23, %v1921_v60 }
 0xa59   : > { %v2131_v43 = vadd.f32 1.0, %v2125_v29 }
 0xa5b   : > { %v2137_v49 = vmul.f32 %v2131_v43, %v1903_v26 }
 0xa5d   : > { %v2140_v30 = vpack.c.bf16 %v2137_v49, %v2136_v28 }
 0xa5f   : > { %2565 = vmatmul.msk.bf16.gmra.mxu3 %vm2173_vm11, %v2140_v30 }
 0xabf   : > { %v2192_v4 = vpop.f32.mrf.mxu2 }
 0xac0   : > { %v2207_v44 = vadd.f32 %v2192_v4, %v3398_v22 }
 0xac2   : > { %v2216_v12 = vadd.f32 %v2214_v33, %v2207_v44 }
 0xac4   : > { %2222 = vst.msk [vmem:[#allocation2] sm:$0xff] %vm887_vm4, %v2216_v12 }
 0xac7   : > { %v2194_v9 = vpop.f32.mrf.mxu2 }
 0xac8   : > { %v2208_v45 = vadd.f32 %v2194_v9, %v3403_v32 }
 0xaca   : > { %v2217_v57 = vadd.f32 %v2214_v33, %v2208_v45 }
 0xacc   : > { %2223 = vst.msk [vmem:[#allocation2 + $0x8] sm:$0xff] %vm887_vm4, %v2217_v57 }
 0xad0   : > { %v2197_v41 = vpop.f32.mrf.mxu3 }
 0xad1   : > { %v2209_v54 = vadd.f32 %v2197_v41, %v3408_v36 }
 0xad3   : > { %v2218_v0 = vadd.f32 %v2214_v33, %v2209_v54 }
 0xad5   : > { %2224 = vst.msk [vmem:[#allocation2 + $0x10] sm:$0xff] %vm887_vm4, %v2218_v0 }
 0xad8   : > { %v2199_v37 = vpop.f32.mrf.mxu3 }
 0xad9   : > { %v2210_v47 = vadd.f32 %v2199_v37, %v3413_v38 }
 0xadb   : > { %v2219_v53 = vadd.f32 %v2214_v33, %v2210_v47 }
 0xadd   : > { %2225 = vst.msk [vmem:[#allocation2 + $0x18] sm:$0xff] %vm887_vm4, %v2219_v53 }
 0xae2   : > { %v2202_v22 = vpop.f32.mrf.mxu3 }
 0xae3   : > { %v2211_v3 = vadd.f32 %v2202_v22, %v3418_v39 }
 0xae5   : > { %v2220_v51 = vadd.f32 %v2214_v33, %v2211_v3 }
 0xae7   : > { %2226 = vst.msk [vmem:[#allocation2 + $0x20] sm:$0xff] %vm887_vm4, %v2220_v51 }
 0xaea   : > { %v2204_v32 = vpop.f32.mrf.mxu3 }
 0xaeb   : > { %v2212_v15 = vadd.f32 %v2204_v32, %v3423_v46  ;;  %2231 = sbr.rel (%p2566_p7) target bundleno = 2820 (0xb04), region = 103 }
 0xaed   : > { %v2221_v31 = vadd.f32 %v2214_v33, %v2212_v15 }
 0xaef   : > { %2227 = vst.msk [vmem:[#allocation2 + $0x28] sm:$0xff] %vm887_vm4, %v2221_v31 }
 0xaf0   : > { %v2232_v36 = vsel %vm887_vm4, %v2216_v12, 0.0  ;;  %v2233_v38 = vsel %vm887_vm4, %v2217_v57, 0.0  ;;  %vm2235_vm5 = vcmask 253952   ;;  %v2244_v27 = vsel %vm887_vm4, %v2219_v53, 0.0 }
 0xaf1   : > { %v2234_v39 = vadd.f32 %v2233_v38, %v2232_v36  ;;  %v2236_v42 = vsel %vm2235_vm5, %v2218_v0, 0.0  ;;  %v2245_v48 = vsel %vm887_vm4, %v2220_v51, 0.0  ;;  %v2247_v35 = vsel %vm2235_vm5, %v2221_v31, 0.0 }
 0xaf2   : > { %v2246_v34 = vadd.f32 %v2245_v48, %v2244_v27  ;;  %vm2255_vm6 = vcmask 1040384   ;;  %vm2257_vm7 = vcmask 254976  }
 0xaf3   : > { %v2237_v46 = vadd.f32 %v2236_v42, %v2234_v39 }
 0xaf4   : > { %v2248_v18 = vadd.f32 %v2247_v35, %v2246_v34 }
 0xaf5   : > { %v2238_v62 = vrot.slane %v2237_v46, 4 }
 0xaf6   : > { %v2249_v17 = vrot.slane %v2248_v18, 4 }
 0xaf7   : > { %v2239_v50 = vadd.f32 %v2238_v62, %v2237_v46 }
 0xaf8   : > { %v2250_v10 = vadd.f32 %v2249_v17, %v2248_v18 }
 0xaf9   : > { %v2240_v56 = vrot.slane %v2239_v50, 2 }
 0xafa   : > { %v2251_v11 = vrot.slane %v2250_v10, 2 }
 0xafb   : > { %v2241_v58 = vadd.f32 %v2240_v56, %v2239_v50 }
 0xafc   : > { %v2252_v55 = vadd.f32 %v2251_v11, %v2250_v10 }
 0xafd   : > { %v2242_v63 = vrot.slane %v2241_v58, 1 }
 0xafe   : > { %v2253_v1 = vrot.slane %v2252_v55, 1 }
 0xaff   : > { %v2243_v20 = vadd.f32 %v2242_v63, %v2241_v58 }
 0xb00   : > { %v2254_v6 = vadd.f32 %v2253_v1, %v2252_v55 }
 0xb02   : > { %v2256_v8 = vsel %vm2255_vm6, %v2243_v20, %v2254_v6 }
 0xb03   : > { %2258 = vst.msk [vmem:[#allocation5] sm:$0x3] %vm2257_vm7, %v2256_v8 }
 0xb04 PF: > { %s3738_s24 = sld [smem:[#allocation9_spill]]  ;;  %s2858_s26 = smov [#allocation5]  }
 0xb05   : > { %s3740_s17 = sld [smem:[#allocation18_spill]]  ;;  %s2267_s5 = sshll.u32 %s2858_s26, 4  ;;  %s2268_s5 = int_to_ptr.vmem [resolvable:$true] %s2267_s5 }
 0xb0a   : > { %s3739_s29 = sadd.s32 4294967295, %s3738_s24  }
 0xb0b   : > { %p2607_p8 = scmp.eq.s32.totalorder %s3739_s29, 1  ;;  %s2269_s25 = sshll.u32 %s3740_s17, 4  ;;  %s2270_s25 = int_to_ptr.hbm [resolvable:$true] %s2269_s25 }
 0xb0d   : > { %2604 = dma.vmem_to_hbm [thread:$0]  (%p2607_p8), %s2268_s5, 32, %s2270_s25, [#allocation6]  }
 0xb0e   : > { %2822 = dma.done.wait (%p2607_p8), [#allocation6], 32  }
 0xb0f   : > { %2824 = vsyncadd (%p2607_p8), [#allocation6], 4294967264 }
 0xb10 PF: > { %s3741_s18 = sld [smem:[#allocation9_spill]] }
 0xb11   : > { %s3742_s24 = sld [smem:[#allocation8_spill]] }
 0xb12   : > { %s3743_s25 = sld [smem:[#allocation10_spill]] }
 0xb16   : > { %s28_s26 = sadd.s32 1, %s3741_s18  }
 0xb17   : > { %p25_p9 = scmp.ge.s32.totalorder %s28_s26, 4  }
 0xb19   :  { %27 = sbr.rel (!%p25_p9) target bundleno = 10 (0xa), region = 180 }
 0xb1e   :  { %2283 = vsyncpa [#allocation6], 1 }
 0xb1f   :  { %2285 = vsyncpa [#allocation6 + $0x1], 1 }

</bundles_post_ra>
